<compile_context>
chip_gen: v7x
topology: tpu7x:2x2x1
jax: 0.10.0
libtpu: 0.0.40
codegen_flags: <defaults>
</compile_context>

<pallas_src>
import functools

import jax
import jax.numpy as jnp
import numpy as np
from jax import lax
from jax.experimental import pallas as pl
from jax.experimental.pallas import tpu as pltpu

EPS = 1e-5


def _softplus(x):
    # log1p-free formulation (Mosaic-safe); abs error < 1e-7 for very negative x.
    safe = jnp.minimum(x, 20.0)
    return jnp.where(x > 20.0, x, jnp.log(1.0 + jnp.exp(safe)))


def _mamba_block_kernel(x_ref, wn1_ref, wzx_ref, wbc_ref, wdt_ref, a_ref,
                        d_ref, wn2_ref, wout_ref, o_ref, state_t):
    f32 = jnp.float32
    bf16 = jnp.bfloat16

    H = d_ref.shape[0]              # SSM hidden dim
    S = state_t.shape[1]            # n_groups * state_dim
    nH = a_ref.shape[0]             # n_heads
    hd = H // nH                    # head_dim
    Lc = x_ref.shape[1]             # sequence chunk length

    # Reset the carried SSM state at the first chunk of every sequence.
    # grid = (batch, chunks): chunks iterate innermost, so this fires exactly
    # once per batch element; with ("parallel", "arbitrary") semantics all
    # chunks of a batch element stay on one core, so the carry is safe.
    @pl.when(pl.program_id(1) == 0)
    def _():
        state_t[...] = jnp.zeros_like(state_t)

    x = x_ref[0]                                                    # (Lc, Dm) f32

    # --- pre-norm RMSNorm (MambaBlock.ssm_norm) ---
    h = x * lax.rsqrt(jnp.mean(x * x, axis=-1, keepdims=True) + EPS) * wn1_ref[...]
    h_bf = h.astype(bf16)

    # --- in_proj (bf16 x bf16 -> f32).  z|x are produced directly in the
    #     transposed (H, Lc) layout so per-head data sits on sublanes and the
    #     lane axis stays chunk-wide (lane-dense) everywhere downstream. ---
    zxT = lax.dot_general(wzx_ref[...], h_bf, (((0,), (1,)), ((), ())),
                          preferred_element_type=f32)               # (2H, Lc)
    bc = jnp.dot(h_bf, wbc_ref[...], preferred_element_type=f32)    # (Lc, 2S)
    zT = zxT[:H]                                                    # (H, Lc)
    xsT = zxT[H:]                                                   # (H, Lc)
    Bm = bc[:, :S]                                                  # (Lc, S)
    Cm = bc[:, S:]                                                  # (Lc, S)

    # --- per-head dt (f32 matmul: decay-exponent fidelity), softplus ---
    dt_rawT = lax.dot_general(wdt_ref[...], h, (((0,), (1,)), ((), ())),
                              preferred_element_type=f32)           # (nH, Lc)
    dtT = _softplus(dt_rawT)
    aT = dtT * a_ref[...]                                           # (nH, Lc), <= 0

    # --- inclusive cumsum of the log-decay along the chunk:
    #     Hillis-Steele shift-adds (VPU), no f32 tril matmul on the MXU ---
    cT = aT
    shift = 1
    while shift < Lc:
        cT = cT + jnp.concatenate(
            [jnp.zeros((nH, shift), f32), cT[:, :Lc - shift]], axis=1)
        shift *= 2

    c_last = cT[:, Lc - 1:Lc]                                       # (nH, 1)
    decay_in = jnp.exp(cT)                                          # chunk start -> t
    decay_out = jnp.exp(c_last - cT)                                # t -> chunk end
    decay_chunk = jnp.exp(c_last)                                   # whole-chunk decay

    def expand_heads(v):
        # (nH, k) -> (H, k): replicate each head over its head_dim rows
        # (leading-dim broadcast + merge: layout-friendly, no lane shuffles).
        k = v.shape[1]
        return jnp.broadcast_to(v[:, None, :], (nH, hd, k)).reshape(H, k)

    decay_in_h = expand_heads(decay_in)                             # (H, Lc)
    w_h = expand_heads(decay_out * dtT)                             # (H, Lc)
    decay_chunk_h = expand_heads(decay_chunk)                       # (H, 1)

    # --- carried-state contribution: ONE full-width (H,S)x(Lc,S)^T matmul ---
    y_state = decay_in_h * lax.dot_general(
        state_t[...].astype(bf16), Cm.astype(bf16),
        (((1,), (1,)), ((), ())), preferred_element_type=f32)       # (H, Lc)

    # --- intra-chunk causal contribution: ONE batched matmul over heads ---
    G = lax.dot_general(Cm.astype(bf16), Bm.astype(bf16),
                        (((1,), (1,)), ((), ())),
                        preferred_element_type=f32)                 # (Lc_t, Lc_s)
    t_idx = lax.broadcasted_iota(jnp.int32, (Lc, Lc), 0)
    s_idx = lax.broadcasted_iota(jnp.int32, (Lc, Lc), 1)
    causal = (t_idx >= s_idx)[None]                                 # (1, Lc, Lc)
    diff = cT[:, :, None] - cT[:, None, :]                          # (nH, Lc_t, Lc_s)
    scores = (G[None] * jnp.exp(jnp.where(causal, diff, -1e30))
              * dtT[:, None, :]).astype(bf16)                       # (nH, Lc, Lc)
    x3 = xsT.reshape(nH, hd, Lc).astype(bf16)                       # (nH, hd, Lc_s)
    y_intra = lax.dot_general(x3, scores, (((2,), (2,)), ((0,), (0,))),
                              preferred_element_type=f32)           # (nH, hd, Lc_t)

    # D skip (D expanded to hidden on the host)
    yT = y_intra.reshape(H, Lc) + y_state + d_ref[...] * xsT        # (H, Lc)

    # --- chunk state update: ONE full-width (H,Lc)x(Lc,S) matmul,
    #     f32 master state, bf16 matmul operands ---
    state_t[...] = decay_chunk_h * state_t[...] + lax.dot_general(
        (w_h * xsT).astype(bf16), Bm.astype(bf16),
        (((1,), (0,)), ((), ())), preferred_element_type=f32)       # (H, S)

    # --- silu(z) gate, post RMSNorm (SSM.ssm_norm), out_proj, residual ---
    g = yT * (zT * (1.0 / (1.0 + jnp.exp(-zT))))
    gn = g * lax.rsqrt(jnp.mean(g * g, axis=0, keepdims=True) + EPS) * wn2_ref[...]
    out = lax.dot_general(gn.astype(bf16), wout_ref[...],
                          (((0,), (0,)), ((), ())),
                          preferred_element_type=f32)               # (Lc, Dm)
    o_ref[0] = x + out


def _vmem_bytes_estimate(Lc, Dm, H, S, nH):
    """Rough per-invocation VMEM working set (weights + streamed blocks +
    persistent state + dominant temporaries)."""
    bf, f4 = 2, 4
    weights = (Dm * 2 * H) * bf + (Dm * 2 * S) * bf + (H * Dm) * bf \
        + (Dm * nH) * f4 + (nH + 3 * H + Dm) * f4
    streams = 2 * 2 * (Lc * Dm * f4)            # x and o blocks, double-buffered
    state = H * S * f4
    temps = (6 * H * Lc + 2 * S * Lc) * f4 + 3 * nH * Lc * Lc * f4
    return weights + streams + state + temps


def mamba_block_pallas(x, p, *, seq_chunk=None):
    bsz, L, Dm = x.shape
    H = p["D"].shape[0]
    nH = p["A"].shape[0]
    S = p["W_bc"].shape[1] // 2
    f32 = jnp.float32

    if seq_chunk is None:
        # 256 feeds the 256-wide MXU on v6e/v7x; prefer 128 on v5e (128x128
        # MXU, no bf16 EUP) or when v7x's 64 MiB VMEM is tight.
        seq_chunk = min(L, 256)
    Lc = seq_chunk
    assert L % Lc == 0, "seq_len must be divisible by the sequence chunk"
    nchunks = L // Lc

    def w_spec(shape):
        n = len(shape)
        return pl.BlockSpec(shape, lambda b, c, n=n: (0,) * n)

    grid_spec = pltpu.PrefetchScalarGridSpec(
        num_scalar_prefetch=0,
        grid=(bsz, nchunks),
        in_specs=[
            pl.BlockSpec((1, Lc, Dm), lambda b, c: (b, c, 0)),  # x (per chunk)
            w_spec((1, Dm)),          # pre-norm weight
            w_spec((Dm, 2 * H)),      # W_z | W_x   (bf16)
            w_spec((Dm, 2 * S)),      # W_B | W_C   (bf16)
            w_spec((Dm, nH)),         # W_dt        (f32)
            w_spec((nH, 1)),          # A = -exp(A_log), per head
            w_spec((H, 1)),           # D expanded to hidden
            w_spec((H, 1)),           # ssm_norm weight
            w_spec((H, Dm)),          # W_out       (bf16)
        ],
        out_specs=pl.BlockSpec((1, Lc, Dm), lambda b, c: (b, c, 0)),
        scratch_shapes=[pltpu.VMEM((H, S), f32)],   # persistent SSM state (per batch)
    )

    flops = (
        2 * bsz * L * Dm * (2 * H + 2 * S + nH)     # in_proj (+ dt proj)
        + 2 * bsz * L * H * Dm                      # out_proj
        + 2 * bsz * L * Lc * (S + H)                # G + intra-chunk scan
        + 4 * bsz * L * H * S                       # state read + state update
    )
    transcendentals = bsz * (nchunks * nH * Lc * Lc + L * (4 * nH + H))
    bytes_accessed = (
        2 * bsz * L * Dm * 4
        + (Dm * (2 * H + 2 * S) + H * Dm) * 2
        + (Dm * nH + 3 * H + nH + Dm) * 4)
    cost = pl.CostEstimate(flops=int(flops), transcendentals=int(transcendentals),
                           bytes_accessed=int(bytes_accessed))

    vmem_limit = int(min(100 * 2 ** 20,
                         max(32 * 2 ** 20,
                             2 * _vmem_bytes_estimate(Lc, Dm, H, S, nH))))

    return pl.pallas_call(
        _mamba_block_kernel,
        out_shape=jax.ShapeDtypeStruct((bsz, L, Dm), f32),
        grid_spec=grid_spec,
        compiler_params=pltpu.CompilerParams(
            dimension_semantics=("parallel", "arbitrary"),  # batch megacore, chunks serial
            vmem_limit_bytes=vmem_limit,
        ),
        cost_estimate=cost,
    )(x, p["wn1"], p["W_zx"], p["W_bc"], p["W_dt"], p["A"], p["D"],
      p["wn2"], p["W_out"])


def base_mamba_forward(x, layers_params, seq_chunk=None):
    for p in layers_params:
        x = mamba_block_pallas(x, p, seq_chunk=seq_chunk)
    return x


# ---------------- pure-JAX reference (same math, for verification) ----------------
def _ref_forward(x, layers_params):
    """Sequential-scan reference.  Projections and B/C mirror the kernel's
    bf16-input / f32-accumulate precision so the comparison checks the chunked
    scan algebra rather than dtype policy."""
    f32, bf16 = jnp.float32, jnp.bfloat16

    def rms(v, w):
        return v * lax.rsqrt(jnp.mean(v * v, axis=-1, keepdims=True) + EPS) * w

    def bdot(a, b):
        return jnp.dot(a.astype(bf16), b, preferred_element_type=f32)

    h = x
    for p in layers_params:
        H = p["D"].shape[0]
        nH = p["A"].shape[0]
        hd = H // nH
        S = p["W_bc"].shape[1] // 2

        xn = rms(h, p["wn1"][0])
        zx = bdot(xn, p["W_zx"])                       # (b, L, 2H)
        bc = bdot(xn, p["W_bc"])                       # (b, L, 2S)
        z = zx[..., :H]
        xs = zx[..., H:].astype(bf16).astype(f32)      # kernel consumes x/B/C as bf16
        B = bc[..., :S].astype(bf16).astype(f32)
        C = bc[..., S:].astype(bf16).astype(f32)
        dt = jax.nn.softplus(jnp.dot(xn, p["W_dt"]))   # (b, L, nH) f32
        dt_full = jnp.repeat(dt, hd, axis=-1)          # (b, L, H)
        A_full = jnp.repeat(p["A"][:, 0], hd)          # (H,)
        D = p["D"][:, 0]                               # (H,)

        def scan_one(xs_b, dtf_b, B_b, C_b):
            def step(state, inp):
                xt, dtt, Bt, Ct = inp
                dA = jnp.exp(dtt * A_full)
                state = dA[None, :] * state + Bt[:, None] * (dtt * xt)[None, :]
                yt = Ct @ state + D * xt
                return state, yt

            _, ys = lax.scan(step, jnp.zeros((S, H), f32),
                             (xs_b, dtf_b, B_b, C_b))
            return ys

        y = jax.vmap(scan_one)(xs, dt_full, B, C)
        g = y * (z * jax.nn.sigmoid(z))
        yn = rms(g, p["wn2"][:, 0])
        h = h + bdot(yn, p["W_out"])
    return h


# ---------------- deterministic parameter init + run ----------------
if __name__ == "__main__":
    # Small BaseMambaArgs-consistent config.
    dim = 32
    n_layers = 2
    n_heads = 4
    state_dim = 16
    n_groups = 1            # default
    multiple_of = 32
    bsz, seq_len = 2, 16
    seq_chunk = 8           # 2 sequence chunks -> exercises the cross-chunk state carry

    # SSM hidden_dim derivation (as in SSM.__init__ with hidden_dim arg = 3*dim)
    hidden = int(2 * (3 * dim) / 3)
    hidden = multiple_of * ((hidden + multiple_of - 1) // multiple_of)   # -> 64
    assert hidden % n_heads == 0
    S = n_groups * state_dim

    key = jax.random.PRNGKey(0)
    kx, kp = jax.random.split(key)
    h_in = jax.random.normal(kx, (bsz, seq_len, dim), jnp.float32)

    layers = []
    for i in range(n_layers):
        k = jax.random.fold_in(kp, i)
        ks = jax.random.split(k, 7)
        in_std = dim ** -0.5
        # init_std_factor="current_depth": out_proj std divided by sqrt(2*(depth+1))
        out_std = hidden ** -0.5 / (2.0 * (i + 1)) ** 0.5
        Wz = jax.random.normal(ks[0], (dim, hidden), jnp.float32) * in_std
        Wx = jax.random.normal(ks[1], (dim, hidden), jnp.float32) * in_std
        WB = jax.random.normal(ks[2], (dim, S), jnp.float32) * in_std
        WC = jax.random.normal(ks[3], (dim, S), jnp.float32) * in_std
        Wdt = jax.random.normal(ks[4], (dim, n_heads), jnp.float32) * in_std
        A = -jax.random.uniform(ks[5], (n_heads, 1), jnp.float32, 1.0, 16.0)
        D = jnp.ones((hidden, 1), jnp.float32)       # D_has_head_dim=False -> 1 per head
        Wout = jax.random.normal(ks[6], (hidden, dim), jnp.float32) * out_std
        layers.append(dict(
            wn1=jnp.ones((1, dim), jnp.float32),
            W_zx=jnp.concatenate([Wz, Wx], axis=1).astype(jnp.bfloat16),
            W_bc=jnp.concatenate([WB, WC], axis=1).astype(jnp.bfloat16),
            W_dt=Wdt,
            A=A,
            D=D,
            wn2=jnp.ones((hidden, 1), jnp.float32),
            W_out=Wout.astype(jnp.bfloat16),
        ))

    fwd = jax.jit(functools.partial(base_mamba_forward, layers_params=layers,
                                    seq_chunk=seq_chunk))
    out = jax.block_until_ready(fwd(h_in))

    ref = _ref_forward(h_in, layers)
    # Tolerance accounts for bf16 matmul operands feeding exponential state
    # dynamics across two residual layers.
    np.testing.assert_allclose(np.asarray(out), np.asarray(ref), rtol=5e-2, atol=5e-2)
    print("KERNEL_OK")
</pallas_src>

<mosaic_0001>
module attributes {stable_mosaic.version = 11 : i64} {
  func.func @_mamba_block_kernel(%arg0: i32, %arg1: i32, %arg2: memref<1x8x32xf32, #tpu.memory_space<vmem>>, %arg3: memref<1x32xf32, #tpu.memory_space<vmem>>, %arg4: memref<32x128xbf16, #tpu.memory_space<vmem>>, %arg5: memref<32x32xbf16, #tpu.memory_space<vmem>>, %arg6: memref<32x4xf32, #tpu.memory_space<vmem>>, %arg7: memref<4x1xf32, #tpu.memory_space<vmem>>, %arg8: memref<64x1xf32, #tpu.memory_space<vmem>>, %arg9: memref<64x1xf32, #tpu.memory_space<vmem>>, %arg10: memref<64x32xbf16, #tpu.memory_space<vmem>>, %arg11: memref<1x8x32xf32, #tpu.memory_space<vmem>>, %arg12: memref<64x16xf32, #tpu.memory_space<vmem>>) attributes {dimension_semantics = [#tpu.dimension_semantics<parallel>, #tpu.dimension_semantics<arbitrary>], iteration_bounds = array<i64: 2, 2>, scalar_prefetch = 0 : i64, scratch_operands = 1 : i64, tpu.core_type = #tpu.core_type<tc>, window_params = [{transform_indices = @transform_0, window_bounds = array<i64: 1, 8, 32>}, {pipeline_mode = #tpu.pipeline_mode<synchronous>, transform_indices = @transform_1, window_bounds = array<i64: 1, 32>}, {pipeline_mode = #tpu.pipeline_mode<synchronous>, transform_indices = @transform_2, window_bounds = array<i64: 32, 128>}, {pipeline_mode = #tpu.pipeline_mode<synchronous>, transform_indices = @transform_3, window_bounds = array<i64: 32, 32>}, {pipeline_mode = #tpu.pipeline_mode<synchronous>, transform_indices = @transform_4, window_bounds = array<i64: 32, 4>}, {pipeline_mode = #tpu.pipeline_mode<synchronous>, transform_indices = @transform_5, window_bounds = array<i64: 4, 1>}, {pipeline_mode = #tpu.pipeline_mode<synchronous>, transform_indices = @transform_6, window_bounds = array<i64: 64, 1>}, {pipeline_mode = #tpu.pipeline_mode<synchronous>, transform_indices = @transform_7, window_bounds = array<i64: 64, 1>}, {pipeline_mode = #tpu.pipeline_mode<synchronous>, transform_indices = @transform_8, window_bounds = array<i64: 64, 32>}, {transform_indices = @transform_9, window_bounds = array<i64: 1, 8, 32>}]} {
    %c0_i32 = arith.constant 0 : i32
    %0 = arith.cmpi eq, %arg1, %c0_i32 : i32
    %1 = arith.extui %0 : i1 to i32
    %c0_i32_0 = arith.constant 0 : i32
    %2 = arith.cmpi ne, %1, %c0_i32_0 : i32
    scf.if %2 {
      %cst_51 = arith.constant 0.000000e+00 : f32
      %148 = vector.broadcast %cst_51 : f32 to vector<64x16xf32>
      %c0_52 = arith.constant 0 : index
      %c0_53 = arith.constant 0 : index
      %149 = vector.load %arg12[%c0_52, %c0_53] : memref<64x16xf32, #tpu.memory_space<vmem>>, vector<64x16xf32>
      tpu.vector_store %arg12[%c0_52, %c0_53], %148 {strides = array<i32>} : memref<64x16xf32, #tpu.memory_space<vmem>>, vector<64x16xf32>,
    } else {
    }
    %c0 = arith.constant 0 : index
    %c0_1 = arith.constant 0 : index
    %c0_2 = arith.constant 0 : index
    %3 = vector.load %arg2[%c0, %c0_1, %c0_2] : memref<1x8x32xf32, #tpu.memory_space<vmem>>, vector<1x8x32xf32>
    %4 = vector.shape_cast %3 : vector<1x8x32xf32> to vector<8x32xf32>
    %5 = arith.mulf %4, %4 : vector<8x32xf32>
    %cst = arith.constant dense<0.000000e+00> : vector<8xf32>
    %6 = vector.multi_reduction <add>, %5, %cst [1] : vector<8x32xf32> to vector<8xf32>
    %7 = vector.shape_cast %6 : vector<8xf32> to vector<8x1xf32>
    %cst_3 = arith.constant 3.200000e+01 : f32
    %8 = vector.broadcast %cst_3 : f32 to vector<8x1xf32>
    %9 = arith.divf %7, %8 : vector<8x1xf32>
    %cst_4 = arith.constant 9.99999974E-6 : f32
    %10 = vector.broadcast %cst_4 : f32 to vector<8x1xf32>
    %11 = arith.addf %9, %10 : vector<8x1xf32>
    %12 = math.rsqrt %11 : vector<8x1xf32>
    %13 = vector.broadcast %12 : vector<8x1xf32> to vector<8x32xf32>
    %14 = arith.mulf %4, %13 : vector<8x32xf32>
    %c0_5 = arith.constant 0 : index
    %c0_6 = arith.constant 0 : index
    %15 = vector.load %arg3[%c0_5, %c0_6] : memref<1x32xf32, #tpu.memory_space<vmem>>, vector<1x32xf32>
    %16 = vector.broadcast %15 : vector<1x32xf32> to vector<8x32xf32>
    %17 = arith.mulf %14, %16 : vector<8x32xf32>
    %18 = arith.truncf %17 : vector<8x32xf32> to vector<8x32xbf16>
    %c0_7 = arith.constant 0 : index
    %c0_8 = arith.constant 0 : index
    %19 = vector.load %arg4[%c0_7, %c0_8] : memref<32x128xbf16, #tpu.memory_space<vmem>>, vector<32x128xbf16>
    %cst_9 = arith.constant dense<0.000000e+00> : vector<128x8xf32>
    %20 = tpu.matmul %19, %18, %cst_9 {dimension_numbers = #tpu.dot_dimension_numbers<[0], [1], [1], [0], [0, 1, 1, 0], [], []>} : vector<32x128xbf16>, vector<8x32xbf16>, vector<128x8xf32> -> vector<128x8xf32>
    %c0_10 = arith.constant 0 : index
    %c0_11 = arith.constant 0 : index
    %21 = vector.load %arg5[%c0_10, %c0_11] : memref<32x32xbf16, #tpu.memory_space<vmem>>, vector<32x32xbf16>
    %cst_12 = arith.constant dense<0.000000e+00> : vector<8x32xf32>
    %22 = tpu.matmul %18, %21, %cst_12 {dimension_numbers = #tpu.dot_dimension_numbers<[1], [0], [0], [1], [0, 0, 1, 1], [], []>} : vector<8x32xbf16>, vector<32x32xbf16>, vector<8x32xf32> -> vector<8x32xf32>
    %23 = vector.extract_strided_slice %20 {offsets = [0, 0], sizes = [64, 8], strides = [1, 1]} : vector<128x8xf32> to vector<64x8xf32>
    %24 = vector.extract_strided_slice %20 {offsets = [64, 0], sizes = [64, 8], strides = [1, 1]} : vector<128x8xf32> to vector<64x8xf32>
    %25 = vector.extract_strided_slice %22 {offsets = [0, 0], sizes = [8, 16], strides = [1, 1]} : vector<8x32xf32> to vector<8x16xf32>
    %26 = vector.extract_strided_slice %22 {offsets = [0, 16], sizes = [8, 16], strides = [1, 1]} : vector<8x32xf32> to vector<8x16xf32>
    %c0_13 = arith.constant 0 : index
    %c0_14 = arith.constant 0 : index
    %27 = vector.load %arg6[%c0_13, %c0_14] : memref<32x4xf32, #tpu.memory_space<vmem>>, vector<32x4xf32>
    %cst_15 = arith.constant dense<0.000000e+00> : vector<4x8xf32>
    %28 = tpu.matmul %27, %17, %cst_15 {dimension_numbers = #tpu.dot_dimension_numbers<[0], [1], [1], [0], [0, 1, 1, 0], [], []>} : vector<32x4xf32>, vector<8x32xf32>, vector<4x8xf32> -> vector<4x8xf32>
    %cst_16 = arith.constant 2.000000e+01 : f32
    %29 = vector.broadcast %cst_16 : f32 to vector<4x8xf32>
    %30 = arith.minimumf %28, %29 : vector<4x8xf32>
    %cst_17 = arith.constant 2.000000e+01 : f32
    %31 = vector.broadcast %cst_17 : f32 to vector<4x8xf32>
    %32 = arith.cmpf ogt, %28, %31 : vector<4x8xf32>
    %33 = math.exp %30 : vector<4x8xf32>
    %cst_18 = arith.constant 1.000000e+00 : f32
    %34 = vector.broadcast %cst_18 : f32 to vector<4x8xf32>
    %35 = arith.addf %34, %33 : vector<4x8xf32>
    %36 = math.log %35 : vector<4x8xf32>
    %37 = arith.select %32, %28, %36 : vector<4x8xi1>, vector<4x8xf32>
    %c0_19 = arith.constant 0 : index
    %c0_20 = arith.constant 0 : index
    %38 = vector.load %arg7[%c0_19, %c0_20] : memref<4x1xf32, #tpu.memory_space<vmem>>, vector<4x1xf32>
    %39 = vector.broadcast %38 : vector<4x1xf32> to vector<4x8xf32>
    %40 = arith.mulf %37, %39 : vector<4x8xf32>
    %cst_21 = arith.constant 0.000000e+00 : f32
    %41 = vector.broadcast %cst_21 : f32 to vector<4x1xf32>
    %42 = vector.extract_strided_slice %40 {offsets = [0, 0], sizes = [4, 7], strides = [1, 1]} : vector<4x8xf32> to vector<4x7xf32>
    %43 = tpu.concatenate %41, %42 in 1 : vector<4x1xf32>, vector<4x7xf32> -> vector<4x8xf32>
    %44 = arith.addf %40, %43 : vector<4x8xf32>
    %cst_22 = arith.constant 0.000000e+00 : f32
    %45 = vector.broadcast %cst_22 : f32 to vector<4x2xf32>
    %46 = vector.extract_strided_slice %44 {offsets = [0, 0], sizes = [4, 6], strides = [1, 1]} : vector<4x8xf32> to vector<4x6xf32>
    %47 = tpu.concatenate %45, %46 in 1 : vector<4x2xf32>, vector<4x6xf32> -> vector<4x8xf32>
    %48 = arith.addf %44, %47 : vector<4x8xf32>
    %cst_23 = arith.constant 0.000000e+00 : f32
    %49 = vector.broadcast %cst_23 : f32 to vector<4x4xf32>
    %50 = vector.extract_strided_slice %48 {offsets = [0, 0], sizes = [4, 4], strides = [1, 1]} : vector<4x8xf32> to vector<4x4xf32>
    %51 = tpu.concatenate %49, %50 in 1 : vector<4x4xf32>, vector<4x4xf32> -> vector<4x8xf32>
    %52 = arith.addf %48, %51 : vector<4x8xf32>
    %53 = vector.extract_strided_slice %52 {offsets = [0, 7], sizes = [4, 1], strides = [1, 1]} : vector<4x8xf32> to vector<4x1xf32>
    %54 = math.exp %52 : vector<4x8xf32>
    %55 = vector.broadcast %53 : vector<4x1xf32> to vector<4x8xf32>
    %56 = arith.subf %55, %52 : vector<4x8xf32>
    %57 = math.exp %56 : vector<4x8xf32>
    %58 = math.exp %53 : vector<4x1xf32>
    %59 = vector.shape_cast %54 : vector<4x8xf32> to vector<4x1x8xf32>
    %60 = vector.shape_cast %59 : vector<4x1x8xf32> to vector<4x1x8xf32>
    %61 = vector.broadcast %60 : vector<4x1x8xf32> to vector<4x16x8xf32>
    %62 = vector.shape_cast %61 : vector<4x16x8xf32> to vector<64x8xf32>
    %63 = arith.mulf %57, %37 : vector<4x8xf32>
    %64 = vector.shape_cast %63 : vector<4x8xf32> to vector<4x1x8xf32>
    %65 = vector.shape_cast %64 : vector<4x1x8xf32> to vector<4x1x8xf32>
    %66 = vector.broadcast %65 : vector<4x1x8xf32> to vector<4x16x8xf32>
    %67 = vector.shape_cast %66 : vector<4x16x8xf32> to vector<64x8xf32>
    %68 = vector.shape_cast %58 : vector<4x1xf32> to vector<4x1x1xf32>
    %69 = vector.shape_cast %68 : vector<4x1x1xf32> to vector<4x1x1xf32>
    %70 = vector.broadcast %69 : vector<4x1x1xf32> to vector<4x16x1xf32>
    %71 = vector.shape_cast %70 : vector<4x16x1xf32> to vector<64x1xf32>
    %c0_24 = arith.constant 0 : index
    %c0_25 = arith.constant 0 : index
    %72 = vector.load %arg12[%c0_24, %c0_25] : memref<64x16xf32, #tpu.memory_space<vmem>>, vector<64x16xf32>
    %73 = arith.truncf %72 : vector<64x16xf32> to vector<64x16xbf16>
    %74 = arith.truncf %26 : vector<8x16xf32> to vector<8x16xbf16>
    %cst_26 = arith.constant dense<0.000000e+00> : vector<64x8xf32>
    %75 = tpu.matmul %73, %74, %cst_26 {dimension_numbers = #tpu.dot_dimension_numbers<[1], [1], [0], [0], [0, 0, 1, 0], [], []>} : vector<64x16xbf16>, vector<8x16xbf16>, vector<64x8xf32> -> vector<64x8xf32>
    %76 = arith.mulf %62, %75 : vector<64x8xf32>
    %77 = arith.truncf %26 : vector<8x16xf32> to vector<8x16xbf16>
    %78 = arith.truncf %25 : vector<8x16xf32> to vector<8x16xbf16>
    %cst_27 = arith.constant dense<0.000000e+00> : vector<8x8xf32>
    %79 = tpu.matmul %77, %78, %cst_27 {dimension_numbers = #tpu.dot_dimension_numbers<[1], [1], [0], [0], [0, 0, 1, 0], [], []>} : vector<8x16xbf16>, vector<8x16xbf16>, vector<8x8xf32> -> vector<8x8xf32>
    %80 = tpu.iota {dimensions = array<i32: 0>} : vector<8x8xi32>
    %81 = tpu.iota {dimensions = array<i32: 1>} : vector<8x8xi32>
    %82 = arith.cmpi sge, %80, %81 : vector<8x8xi32>
    %83 = vector.shape_cast %82 : vector<8x8xi1> to vector<1x8x8xi1>
    %84 = vector.shape_cast %52 : vector<4x8xf32> to vector<4x8x1xf32>
    %85 = vector.shape_cast %52 : vector<4x8xf32> to vector<4x1x8xf32>
    %86 = vector.broadcast %84 : vector<4x8x1xf32> to vector<4x8x8xf32>
    %87 = vector.broadcast %85 : vector<4x1x8xf32> to vector<4x8x8xf32>
    %88 = arith.subf %86, %87 : vector<4x8x8xf32>
    %89 = vector.shape_cast %79 : vector<8x8xf32> to vector<1x8x8xf32>
    %cst_28 = arith.constant -1.000000e+30 : f32
    %90 = vector.shape_cast %83 : vector<1x8x8xi1> to vector<1x8x8xi1>
    %91 = vector.broadcast %90 : vector<1x8x8xi1> to vector<4x8x8xi1>
    %92 = vector.broadcast %cst_28 : f32 to vector<4x8x8xf32>
    %93 = arith.select %91, %88, %92 : vector<4x8x8xi1>, vector<4x8x8xf32>
    %94 = math.exp %93 : vector<4x8x8xf32>
    %95 = vector.broadcast %89 : vector<1x8x8xf32> to vector<4x8x8xf32>
    %96 = arith.mulf %95, %94 : vector<4x8x8xf32>
    %97 = vector.shape_cast %37 : vector<4x8xf32> to vector<4x1x8xf32>
    %98 = vector.broadcast %97 : vector<4x1x8xf32> to vector<4x8x8xf32>
    %99 = arith.mulf %96, %98 : vector<4x8x8xf32>
    %100 = arith.truncf %99 : vector<4x8x8xf32> to vector<4x8x8xbf16>
    %101 = vector.shape_cast %24 : vector<64x8xf32> to vector<4x16x8xf32>
    %102 = arith.truncf %101 : vector<4x16x8xf32> to vector<4x16x8xbf16>
    %cst_29 = arith.constant dense<0.000000e+00> : vector<4x16x8xf32>
    %103 = tpu.matmul %102, %100, %cst_29 {dimension_numbers = #tpu.dot_dimension_numbers<[2], [2], [1], [1], [0, 0, 0, 1, 1, 1], [0], [0]>} : vector<4x16x8xbf16>, vector<4x8x8xbf16>, vector<4x16x8xf32> -> vector<4x16x8xf32>
    %104 = vector.shape_cast %103 : vector<4x16x8xf32> to vector<64x8xf32>
    %105 = arith.addf %104, %76 : vector<64x8xf32>
    %c0_30 = arith.constant 0 : index
    %c0_31 = arith.constant 0 : index
    %106 = vector.load %arg8[%c0_30, %c0_31] : memref<64x1xf32, #tpu.memory_space<vmem>>, vector<64x1xf32>
    %107 = vector.broadcast %106 : vector<64x1xf32> to vector<64x8xf32>
    %108 = arith.mulf %107, %24 : vector<64x8xf32>
    %109 = arith.addf %105, %108 : vector<64x8xf32>
    %c0_32 = arith.constant 0 : index
    %c0_33 = arith.constant 0 : index
    %110 = vector.load %arg12[%c0_32, %c0_33] : memref<64x16xf32, #tpu.memory_space<vmem>>, vector<64x16xf32>
    %111 = vector.broadcast %71 : vector<64x1xf32> to vector<64x16xf32>
    %112 = arith.mulf %111, %110 : vector<64x16xf32>
    %113 = arith.mulf %67, %24 : vector<64x8xf32>
    %114 = arith.truncf %113 : vector<64x8xf32> to vector<64x8xbf16>
    %115 = arith.truncf %25 : vector<8x16xf32> to vector<8x16xbf16>
    %cst_34 = arith.constant dense<0.000000e+00> : vector<64x16xf32>
    %116 = tpu.matmul %114, %115, %cst_34 {dimension_numbers = #tpu.dot_dimension_numbers<[1], [0], [0], [1], [0, 0, 1, 1], [], []>} : vector<64x8xbf16>, vector<8x16xbf16>, vector<64x16xf32> -> vector<64x16xf32>
    %117 = arith.addf %112, %116 : vector<64x16xf32>
    %c0_35 = arith.constant 0 : index
    %c0_36 = arith.constant 0 : index
    %118 = vector.load %arg12[%c0_35, %c0_36] : memref<64x16xf32, #tpu.memory_space<vmem>>, vector<64x16xf32>
    tpu.vector_store %arg12[%c0_35, %c0_36], %117 {strides = array<i32>} : memref<64x16xf32, #tpu.memory_space<vmem>>, vector<64x16xf32>,
    %cst_37 = arith.constant 0.000000e+00 : f32
    %119 = vector.broadcast %cst_37 : f32 to vector<64x8xf32>
    %120 = arith.subf %119, %23 : vector<64x8xf32>
    %121 = math.exp %120 : vector<64x8xf32>
    %cst_38 = arith.constant 1.000000e+00 : f32
    %122 = vector.broadcast %cst_38 : f32 to vector<64x8xf32>
    %123 = arith.addf %122, %121 : vector<64x8xf32>
    %cst_39 = arith.constant 1.000000e+00 : f32
    %124 = vector.broadcast %cst_39 : f32 to vector<64x8xf32>
    %125 = arith.divf %124, %123 : vector<64x8xf32>
    %126 = arith.mulf %23, %125 : vector<64x8xf32>
    %127 = arith.mulf %109, %126 : vector<64x8xf32>
    %128 = arith.mulf %127, %127 : vector<64x8xf32>
    %cst_40 = arith.constant dense<0.000000e+00> : vector<8xf32>
    %129 = vector.multi_reduction <add>, %128, %cst_40 [0] : vector<64x8xf32> to vector<8xf32>
    %130 = vector.shape_cast %129 : vector<8xf32> to vector<1x8xf32>
    %cst_41 = arith.constant 6.400000e+01 : f32
    %131 = vector.broadcast %cst_41 : f32 to vector<1x8xf32>
    %132 = arith.divf %130, %131 : vector<1x8xf32>
    %cst_42 = arith.constant 9.99999974E-6 : f32
    %133 = vector.broadcast %cst_42 : f32 to vector<1x8xf32>
    %134 = arith.addf %132, %133 : vector<1x8xf32>
    %135 = math.rsqrt %134 : vector<1x8xf32>
    %136 = vector.broadcast %135 : vector<1x8xf32> to vector<64x8xf32>
    %137 = arith.mulf %127, %136 : vector<64x8xf32>
    %c0_43 = arith.constant 0 : index
    %c0_44 = arith.constant 0 : index
    %138 = vector.load %arg9[%c0_43, %c0_44] : memref<64x1xf32, #tpu.memory_space<vmem>>, vector<64x1xf32>
    %139 = vector.broadcast %138 : vector<64x1xf32> to vector<64x8xf32>
    %140 = arith.mulf %137, %139 : vector<64x8xf32>
    %141 = arith.truncf %140 : vector<64x8xf32> to vector<64x8xbf16>
    %c0_45 = arith.constant 0 : index
    %c0_46 = arith.constant 0 : index
    %142 = vector.load %arg10[%c0_45, %c0_46] : memref<64x32xbf16, #tpu.memory_space<vmem>>, vector<64x32xbf16>
    %cst_47 = arith.constant dense<0.000000e+00> : vector<8x32xf32>
    %143 = tpu.matmul %141, %142, %cst_47 {dimension_numbers = #tpu.dot_dimension_numbers<[0], [0], [1], [1], [0, 1, 1, 1], [], []>} : vector<64x8xbf16>, vector<64x32xbf16>, vector<8x32xf32> -> vector<8x32xf32>
    %144 = arith.addf %4, %143 : vector<8x32xf32>
    %c0_48 = arith.constant 0 : index
    %c0_49 = arith.constant 0 : index
    %c0_50 = arith.constant 0 : index
    %145 = vector.load %arg11[%c0_48, %c0_49, %c0_50] : memref<1x8x32xf32, #tpu.memory_space<vmem>>, vector<1x8x32xf32>
    %146 = vector.shape_cast %145 : vector<1x8x32xf32> to vector<8x32xf32>
    %147 = vector.shape_cast %144 : vector<8x32xf32> to vector<1x8x32xf32>
    tpu.vector_store %arg11[%c0_48, %c0_49, %c0_50], %147 {strides = array<i32>} : memref<1x8x32xf32, #tpu.memory_space<vmem>>, vector<1x8x32xf32>,
    return
  }
  func.func @transform_0(%arg0: i32, %arg1: i32) -> (i32, i32, i32) {
    %c0_i32 = arith.constant 0 : i32
    %c0_i32_0 = arith.constant 0 : i32
    return %arg0, %arg1, %c0_i32 : i32, i32, i32
  }
  func.func @transform_1(%arg0: i32, %arg1: i32) -> (i32, i32) {
    %c0_i32 = arith.constant 0 : i32
    %c0_i32_0 = arith.constant 0 : i32
    %c0_i32_1 = arith.constant 0 : i32
    return %c0_i32, %c0_i32_0 : i32, i32
  }
  func.func @transform_2(%arg0: i32, %arg1: i32) -> (i32, i32) {
    %c0_i32 = arith.constant 0 : i32
    %c0_i32_0 = arith.constant 0 : i32
    %c0_i32_1 = arith.constant 0 : i32
    return %c0_i32, %c0_i32_0 : i32, i32
  }
  func.func @transform_3(%arg0: i32, %arg1: i32) -> (i32, i32) {
    %c0_i32 = arith.constant 0 : i32
    %c0_i32_0 = arith.constant 0 : i32
    %c0_i32_1 = arith.constant 0 : i32
    return %c0_i32, %c0_i32_0 : i32, i32
  }
  func.func @transform_4(%arg0: i32, %arg1: i32) -> (i32, i32) {
    %c0_i32 = arith.constant 0 : i32
    %c0_i32_0 = arith.constant 0 : i32
    %c0_i32_1 = arith.constant 0 : i32
    return %c0_i32, %c0_i32_0 : i32, i32
  }
  func.func @transform_5(%arg0: i32, %arg1: i32) -> (i32, i32) {
    %c0_i32 = arith.constant 0 : i32
    %c0_i32_0 = arith.constant 0 : i32
    %c0_i32_1 = arith.constant 0 : i32
    return %c0_i32, %c0_i32_0 : i32, i32
  }
  func.func @transform_6(%arg0: i32, %arg1: i32) -> (i32, i32) {
    %c0_i32 = arith.constant 0 : i32
    %c0_i32_0 = arith.constant 0 : i32
    %c0_i32_1 = arith.constant 0 : i32
    return %c0_i32, %c0_i32_0 : i32, i32
  }
  func.func @transform_7(%arg0: i32, %arg1: i32) -> (i32, i32) {
    %c0_i32 = arith.constant 0 : i32
    %c0_i32_0 = arith.constant 0 : i32
    %c0_i32_1 = arith.constant 0 : i32
    return %c0_i32, %c0_i32_0 : i32, i32
  }
  func.func @transform_8(%arg0: i32, %arg1: i32) -> (i32, i32) {
    %c0_i32 = arith.constant 0 : i32
    %c0_i32_0 = arith.constant 0 : i32
    %c0_i32_1 = arith.constant 0 : i32
    return %c0_i32, %c0_i32_0 : i32, i32
  }
  func.func @transform_9(%arg0: i32, %arg1: i32) -> (i32, i32, i32) {
    %c0_i32 = arith.constant 0 : i32
    %c0_i32_0 = arith.constant 0 : i32
    return %arg0, %arg1, %c0_i32 : i32, i32, i32
  }
}

module attributes {stable_mosaic.version = 11 : i64} {
  func.func @_mamba_block_kernel(%arg0: i32, %arg1: i32, %arg2: memref<1x8x32xf32, #tpu.memory_space<vmem>>, %arg3: memref<1x32xf32, #tpu.memory_space<vmem>>, %arg4: memref<32x128xbf16, #tpu.memory_space<vmem>>, %arg5: memref<32x32xbf16, #tpu.memory_space<vmem>>, %arg6: memref<32x4xf32, #tpu.memory_space<vmem>>, %arg7: memref<4x1xf32, #tpu.memory_space<vmem>>, %arg8: memref<64x1xf32, #tpu.memory_space<vmem>>, %arg9: memref<64x1xf32, #tpu.memory_space<vmem>>, %arg10: memref<64x32xbf16, #tpu.memory_space<vmem>>, %arg11: memref<1x8x32xf32, #tpu.memory_space<vmem>>, %arg12: memref<64x16xf32, #tpu.memory_space<vmem>>) attributes {dimension_semantics = [#tpu.dimension_semantics<parallel>, #tpu.dimension_semantics<arbitrary>], iteration_bounds = array<i64: 2, 2>, scalar_prefetch = 0 : i64, scratch_operands = 1 : i64, tpu.core_type = #tpu.core_type<tc>, window_params = [{transform_indices = @transform_0, window_bounds = array<i64: 1, 8, 32>}, {pipeline_mode = #tpu.pipeline_mode<synchronous>, transform_indices = @transform_1, window_bounds = array<i64: 1, 32>}, {pipeline_mode = #tpu.pipeline_mode<synchronous>, transform_indices = @transform_2, window_bounds = array<i64: 32, 128>}, {pipeline_mode = #tpu.pipeline_mode<synchronous>, transform_indices = @transform_3, window_bounds = array<i64: 32, 32>}, {pipeline_mode = #tpu.pipeline_mode<synchronous>, transform_indices = @transform_4, window_bounds = array<i64: 32, 4>}, {pipeline_mode = #tpu.pipeline_mode<synchronous>, transform_indices = @transform_5, window_bounds = array<i64: 4, 1>}, {pipeline_mode = #tpu.pipeline_mode<synchronous>, transform_indices = @transform_6, window_bounds = array<i64: 64, 1>}, {pipeline_mode = #tpu.pipeline_mode<synchronous>, transform_indices = @transform_7, window_bounds = array<i64: 64, 1>}, {pipeline_mode = #tpu.pipeline_mode<synchronous>, transform_indices = @transform_8, window_bounds = array<i64: 64, 32>}, {transform_indices = @transform_9, window_bounds = array<i64: 1, 8, 32>}]} {
    %c0_i32 = arith.constant 0 : i32
    %0 = arith.cmpi eq, %arg1, %c0_i32 : i32
    %1 = arith.extui %0 : i1 to i32
    %c0_i32_0 = arith.constant 0 : i32
    %2 = arith.cmpi ne, %1, %c0_i32_0 : i32
    scf.if %2 {
      %cst_51 = arith.constant 0.000000e+00 : f32
      %148 = vector.broadcast %cst_51 : f32 to vector<64x16xf32>
      %c0_52 = arith.constant 0 : index
      %c0_53 = arith.constant 0 : index
      %149 = vector.load %arg12[%c0_52, %c0_53] : memref<64x16xf32, #tpu.memory_space<vmem>>, vector<64x16xf32>
      tpu.vector_store %arg12[%c0_52, %c0_53], %148 {strides = array<i32>} : memref<64x16xf32, #tpu.memory_space<vmem>>, vector<64x16xf32>,
    } else {
    }
    %c0 = arith.constant 0 : index
    %c0_1 = arith.constant 0 : index
    %c0_2 = arith.constant 0 : index
    %3 = vector.load %arg2[%c0, %c0_1, %c0_2] : memref<1x8x32xf32, #tpu.memory_space<vmem>>, vector<1x8x32xf32>
    %4 = vector.shape_cast %3 : vector<1x8x32xf32> to vector<8x32xf32>
    %5 = arith.mulf %4, %4 : vector<8x32xf32>
    %cst = arith.constant dense<0.000000e+00> : vector<8xf32>
    %6 = vector.multi_reduction <add>, %5, %cst [1] : vector<8x32xf32> to vector<8xf32>
    %7 = vector.shape_cast %6 : vector<8xf32> to vector<8x1xf32>
    %cst_3 = arith.constant 3.200000e+01 : f32
    %8 = vector.broadcast %cst_3 : f32 to vector<8x1xf32>
    %9 = arith.divf %7, %8 : vector<8x1xf32>
    %cst_4 = arith.constant 9.99999974E-6 : f32
    %10 = vector.broadcast %cst_4 : f32 to vector<8x1xf32>
    %11 = arith.addf %9, %10 : vector<8x1xf32>
    %12 = math.rsqrt %11 : vector<8x1xf32>
    %13 = vector.broadcast %12 : vector<8x1xf32> to vector<8x32xf32>
    %14 = arith.mulf %4, %13 : vector<8x32xf32>
    %c0_5 = arith.constant 0 : index
    %c0_6 = arith.constant 0 : index
    %15 = vector.load %arg3[%c0_5, %c0_6] : memref<1x32xf32, #tpu.memory_space<vmem>>, vector<1x32xf32>
    %16 = vector.broadcast %15 : vector<1x32xf32> to vector<8x32xf32>
    %17 = arith.mulf %14, %16 : vector<8x32xf32>
    %18 = arith.truncf %17 : vector<8x32xf32> to vector<8x32xbf16>
    %c0_7 = arith.constant 0 : index
    %c0_8 = arith.constant 0 : index
    %19 = vector.load %arg4[%c0_7, %c0_8] : memref<32x128xbf16, #tpu.memory_space<vmem>>, vector<32x128xbf16>
    %cst_9 = arith.constant dense<0.000000e+00> : vector<128x8xf32>
    %20 = tpu.matmul %19, %18, %cst_9 {dimension_numbers = #tpu.dot_dimension_numbers<[0], [1], [1], [0], [0, 1, 1, 0], [], []>} : vector<32x128xbf16>, vector<8x32xbf16>, vector<128x8xf32> -> vector<128x8xf32>
    %c0_10 = arith.constant 0 : index
    %c0_11 = arith.constant 0 : index
    %21 = vector.load %arg5[%c0_10, %c0_11] : memref<32x32xbf16, #tpu.memory_space<vmem>>, vector<32x32xbf16>
    %cst_12 = arith.constant dense<0.000000e+00> : vector<8x32xf32>
    %22 = tpu.matmul %18, %21, %cst_12 {dimension_numbers = #tpu.dot_dimension_numbers<[1], [0], [0], [1], [0, 0, 1, 1], [], []>} : vector<8x32xbf16>, vector<32x32xbf16>, vector<8x32xf32> -> vector<8x32xf32>
    %23 = vector.extract_strided_slice %20 {offsets = [0, 0], sizes = [64, 8], strides = [1, 1]} : vector<128x8xf32> to vector<64x8xf32>
    %24 = vector.extract_strided_slice %20 {offsets = [64, 0], sizes = [64, 8], strides = [1, 1]} : vector<128x8xf32> to vector<64x8xf32>
    %25 = vector.extract_strided_slice %22 {offsets = [0, 0], sizes = [8, 16], strides = [1, 1]} : vector<8x32xf32> to vector<8x16xf32>
    %26 = vector.extract_strided_slice %22 {offsets = [0, 16], sizes = [8, 16], strides = [1, 1]} : vector<8x32xf32> to vector<8x16xf32>
    %c0_13 = arith.constant 0 : index
    %c0_14 = arith.constant 0 : index
    %27 = vector.load %arg6[%c0_13, %c0_14] : memref<32x4xf32, #tpu.memory_space<vmem>>, vector<32x4xf32>
    %cst_15 = arith.constant dense<0.000000e+00> : vector<4x8xf32>
    %28 = tpu.matmul %27, %17, %cst_15 {dimension_numbers = #tpu.dot_dimension_numbers<[0], [1], [1], [0], [0, 1, 1, 0], [], []>} : vector<32x4xf32>, vector<8x32xf32>, vector<4x8xf32> -> vector<4x8xf32>
    %cst_16 = arith.constant 2.000000e+01 : f32
    %29 = vector.broadcast %cst_16 : f32 to vector<4x8xf32>
    %30 = arith.minimumf %28, %29 : vector<4x8xf32>
    %cst_17 = arith.constant 2.000000e+01 : f32
    %31 = vector.broadcast %cst_17 : f32 to vector<4x8xf32>
    %32 = arith.cmpf ogt, %28, %31 : vector<4x8xf32>
    %33 = math.exp %30 : vector<4x8xf32>
    %cst_18 = arith.constant 1.000000e+00 : f32
    %34 = vector.broadcast %cst_18 : f32 to vector<4x8xf32>
    %35 = arith.addf %34, %33 : vector<4x8xf32>
    %36 = math.log %35 : vector<4x8xf32>
    %37 = arith.select %32, %28, %36 : vector<4x8xi1>, vector<4x8xf32>
    %c0_19 = arith.constant 0 : index
    %c0_20 = arith.constant 0 : index
    %38 = vector.load %arg7[%c0_19, %c0_20] : memref<4x1xf32, #tpu.memory_space<vmem>>, vector<4x1xf32>
    %39 = vector.broadcast %38 : vector<4x1xf32> to vector<4x8xf32>
    %40 = arith.mulf %37, %39 : vector<4x8xf32>
    %cst_21 = arith.constant 0.000000e+00 : f32
    %41 = vector.broadcast %cst_21 : f32 to vector<4x1xf32>
    %42 = vector.extract_strided_slice %40 {offsets = [0, 0], sizes = [4, 7], strides = [1, 1]} : vector<4x8xf32> to vector<4x7xf32>
    %43 = tpu.concatenate %41, %42 in 1 : vector<4x1xf32>, vector<4x7xf32> -> vector<4x8xf32>
    %44 = arith.addf %40, %43 : vector<4x8xf32>
    %cst_22 = arith.constant 0.000000e+00 : f32
    %45 = vector.broadcast %cst_22 : f32 to vector<4x2xf32>
    %46 = vector.extract_strided_slice %44 {offsets = [0, 0], sizes = [4, 6], strides = [1, 1]} : vector<4x8xf32> to vector<4x6xf32>
    %47 = tpu.concatenate %45, %46 in 1 : vector<4x2xf32>, vector<4x6xf32> -> vector<4x8xf32>
    %48 = arith.addf %44, %47 : vector<4x8xf32>
    %cst_23 = arith.constant 0.000000e+00 : f32
    %49 = vector.broadcast %cst_23 : f32 to vector<4x4xf32>
    %50 = vector.extract_strided_slice %48 {offsets = [0, 0], sizes = [4, 4], strides = [1, 1]} : vector<4x8xf32> to vector<4x4xf32>
    %51 = tpu.concatenate %49, %50 in 1 : vector<4x4xf32>, vector<4x4xf32> -> vector<4x8xf32>
    %52 = arith.addf %48, %51 : vector<4x8xf32>
    %53 = vector.extract_strided_slice %52 {offsets = [0, 7], sizes = [4, 1], strides = [1, 1]} : vector<4x8xf32> to vector<4x1xf32>
    %54 = math.exp %52 : vector<4x8xf32>
    %55 = vector.broadcast %53 : vector<4x1xf32> to vector<4x8xf32>
    %56 = arith.subf %55, %52 : vector<4x8xf32>
    %57 = math.exp %56 : vector<4x8xf32>
    %58 = math.exp %53 : vector<4x1xf32>
    %59 = vector.shape_cast %54 : vector<4x8xf32> to vector<4x1x8xf32>
    %60 = vector.shape_cast %59 : vector<4x1x8xf32> to vector<4x1x8xf32>
    %61 = vector.broadcast %60 : vector<4x1x8xf32> to vector<4x16x8xf32>
    %62 = vector.shape_cast %61 : vector<4x16x8xf32> to vector<64x8xf32>
    %63 = arith.mulf %57, %37 : vector<4x8xf32>
    %64 = vector.shape_cast %63 : vector<4x8xf32> to vector<4x1x8xf32>
    %65 = vector.shape_cast %64 : vector<4x1x8xf32> to vector<4x1x8xf32>
    %66 = vector.broadcast %65 : vector<4x1x8xf32> to vector<4x16x8xf32>
    %67 = vector.shape_cast %66 : vector<4x16x8xf32> to vector<64x8xf32>
    %68 = vector.shape_cast %58 : vector<4x1xf32> to vector<4x1x1xf32>
    %69 = vector.shape_cast %68 : vector<4x1x1xf32> to vector<4x1x1xf32>
    %70 = vector.broadcast %69 : vector<4x1x1xf32> to vector<4x16x1xf32>
    %71 = vector.shape_cast %70 : vector<4x16x1xf32> to vector<64x1xf32>
    %c0_24 = arith.constant 0 : index
    %c0_25 = arith.constant 0 : index
    %72 = vector.load %arg12[%c0_24, %c0_25] : memref<64x16xf32, #tpu.memory_space<vmem>>, vector<64x16xf32>
    %73 = arith.truncf %72 : vector<64x16xf32> to vector<64x16xbf16>
    %74 = arith.truncf %26 : vector<8x16xf32> to vector<8x16xbf16>
    %cst_26 = arith.constant dense<0.000000e+00> : vector<64x8xf32>
    %75 = tpu.matmul %73, %74, %cst_26 {dimension_numbers = #tpu.dot_dimension_numbers<[1], [1], [0], [0], [0, 0, 1, 0], [], []>} : vector<64x16xbf16>, vector<8x16xbf16>, vector<64x8xf32> -> vector<64x8xf32>
    %76 = arith.mulf %62, %75 : vector<64x8xf32>
    %77 = arith.truncf %26 : vector<8x16xf32> to vector<8x16xbf16>
    %78 = arith.truncf %25 : vector<8x16xf32> to vector<8x16xbf16>
    %cst_27 = arith.constant dense<0.000000e+00> : vector<8x8xf32>
    %79 = tpu.matmul %77, %78, %cst_27 {dimension_numbers = #tpu.dot_dimension_numbers<[1], [1], [0], [0], [0, 0, 1, 0], [], []>} : vector<8x16xbf16>, vector<8x16xbf16>, vector<8x8xf32> -> vector<8x8xf32>
    %80 = tpu.iota {dimensions = array<i32: 0>} : vector<8x8xi32>
    %81 = tpu.iota {dimensions = array<i32: 1>} : vector<8x8xi32>
    %82 = arith.cmpi sge, %80, %81 : vector<8x8xi32>
    %83 = vector.shape_cast %82 : vector<8x8xi1> to vector<1x8x8xi1>
    %84 = vector.shape_cast %52 : vector<4x8xf32> to vector<4x8x1xf32>
    %85 = vector.shape_cast %52 : vector<4x8xf32> to vector<4x1x8xf32>
    %86 = vector.broadcast %84 : vector<4x8x1xf32> to vector<4x8x8xf32>
    %87 = vector.broadcast %85 : vector<4x1x8xf32> to vector<4x8x8xf32>
    %88 = arith.subf %86, %87 : vector<4x8x8xf32>
    %89 = vector.shape_cast %79 : vector<8x8xf32> to vector<1x8x8xf32>
    %cst_28 = arith.constant -1.000000e+30 : f32
    %90 = vector.shape_cast %83 : vector<1x8x8xi1> to vector<1x8x8xi1>
    %91 = vector.broadcast %90 : vector<1x8x8xi1> to vector<4x8x8xi1>
    %92 = vector.broadcast %cst_28 : f32 to vector<4x8x8xf32>
    %93 = arith.select %91, %88, %92 : vector<4x8x8xi1>, vector<4x8x8xf32>
    %94 = math.exp %93 : vector<4x8x8xf32>
    %95 = vector.broadcast %89 : vector<1x8x8xf32> to vector<4x8x8xf32>
    %96 = arith.mulf %95, %94 : vector<4x8x8xf32>
    %97 = vector.shape_cast %37 : vector<4x8xf32> to vector<4x1x8xf32>
    %98 = vector.broadcast %97 : vector<4x1x8xf32> to vector<4x8x8xf32>
    %99 = arith.mulf %96, %98 : vector<4x8x8xf32>
    %100 = arith.truncf %99 : vector<4x8x8xf32> to vector<4x8x8xbf16>
    %101 = vector.shape_cast %24 : vector<64x8xf32> to vector<4x16x8xf32>
    %102 = arith.truncf %101 : vector<4x16x8xf32> to vector<4x16x8xbf16>
    %cst_29 = arith.constant dense<0.000000e+00> : vector<4x16x8xf32>
    %103 = tpu.matmul %102, %100, %cst_29 {dimension_numbers = #tpu.dot_dimension_numbers<[2], [2], [1], [1], [0, 0, 0, 1, 1, 1], [0], [0]>} : vector<4x16x8xbf16>, vector<4x8x8xbf16>, vector<4x16x8xf32> -> vector<4x16x8xf32>
    %104 = vector.shape_cast %103 : vector<4x16x8xf32> to vector<64x8xf32>
    %105 = arith.addf %104, %76 : vector<64x8xf32>
    %c0_30 = arith.constant 0 : index
    %c0_31 = arith.constant 0 : index
    %106 = vector.load %arg8[%c0_30, %c0_31] : memref<64x1xf32, #tpu.memory_space<vmem>>, vector<64x1xf32>
    %107 = vector.broadcast %106 : vector<64x1xf32> to vector<64x8xf32>
    %108 = arith.mulf %107, %24 : vector<64x8xf32>
    %109 = arith.addf %105, %108 : vector<64x8xf32>
    %c0_32 = arith.constant 0 : index
    %c0_33 = arith.constant 0 : index
    %110 = vector.load %arg12[%c0_32, %c0_33] : memref<64x16xf32, #tpu.memory_space<vmem>>, vector<64x16xf32>
    %111 = vector.broadcast %71 : vector<64x1xf32> to vector<64x16xf32>
    %112 = arith.mulf %111, %110 : vector<64x16xf32>
    %113 = arith.mulf %67, %24 : vector<64x8xf32>
    %114 = arith.truncf %113 : vector<64x8xf32> to vector<64x8xbf16>
    %115 = arith.truncf %25 : vector<8x16xf32> to vector<8x16xbf16>
    %cst_34 = arith.constant dense<0.000000e+00> : vector<64x16xf32>
    %116 = tpu.matmul %114, %115, %cst_34 {dimension_numbers = #tpu.dot_dimension_numbers<[1], [0], [0], [1], [0, 0, 1, 1], [], []>} : vector<64x8xbf16>, vector<8x16xbf16>, vector<64x16xf32> -> vector<64x16xf32>
    %117 = arith.addf %112, %116 : vector<64x16xf32>
    %c0_35 = arith.constant 0 : index
    %c0_36 = arith.constant 0 : index
    %118 = vector.load %arg12[%c0_35, %c0_36] : memref<64x16xf32, #tpu.memory_space<vmem>>, vector<64x16xf32>
    tpu.vector_store %arg12[%c0_35, %c0_36], %117 {strides = array<i32>} : memref<64x16xf32, #tpu.memory_space<vmem>>, vector<64x16xf32>,
    %cst_37 = arith.constant 0.000000e+00 : f32
    %119 = vector.broadcast %cst_37 : f32 to vector<64x8xf32>
    %120 = arith.subf %119, %23 : vector<64x8xf32>
    %121 = math.exp %120 : vector<64x8xf32>
    %cst_38 = arith.constant 1.000000e+00 : f32
    %122 = vector.broadcast %cst_38 : f32 to vector<64x8xf32>
    %123 = arith.addf %122, %121 : vector<64x8xf32>
    %cst_39 = arith.constant 1.000000e+00 : f32
    %124 = vector.broadcast %cst_39 : f32 to vector<64x8xf32>
    %125 = arith.divf %124, %123 : vector<64x8xf32>
    %126 = arith.mulf %23, %125 : vector<64x8xf32>
    %127 = arith.mulf %109, %126 : vector<64x8xf32>
    %128 = arith.mulf %127, %127 : vector<64x8xf32>
    %cst_40 = arith.constant dense<0.000000e+00> : vector<8xf32>
    %129 = vector.multi_reduction <add>, %128, %cst_40 [0] : vector<64x8xf32> to vector<8xf32>
    %130 = vector.shape_cast %129 : vector<8xf32> to vector<1x8xf32>
    %cst_41 = arith.constant 6.400000e+01 : f32
    %131 = vector.broadcast %cst_41 : f32 to vector<1x8xf32>
    %132 = arith.divf %130, %131 : vector<1x8xf32>
    %cst_42 = arith.constant 9.99999974E-6 : f32
    %133 = vector.broadcast %cst_42 : f32 to vector<1x8xf32>
    %134 = arith.addf %132, %133 : vector<1x8xf32>
    %135 = math.rsqrt %134 : vector<1x8xf32>
    %136 = vector.broadcast %135 : vector<1x8xf32> to vector<64x8xf32>
    %137 = arith.mulf %127, %136 : vector<64x8xf32>
    %c0_43 = arith.constant 0 : index
    %c0_44 = arith.constant 0 : index
    %138 = vector.load %arg9[%c0_43, %c0_44] : memref<64x1xf32, #tpu.memory_space<vmem>>, vector<64x1xf32>
    %139 = vector.broadcast %138 : vector<64x1xf32> to vector<64x8xf32>
    %140 = arith.mulf %137, %139 : vector<64x8xf32>
    %141 = arith.truncf %140 : vector<64x8xf32> to vector<64x8xbf16>
    %c0_45 = arith.constant 0 : index
    %c0_46 = arith.constant 0 : index
    %142 = vector.load %arg10[%c0_45, %c0_46] : memref<64x32xbf16, #tpu.memory_space<vmem>>, vector<64x32xbf16>
    %cst_47 = arith.constant dense<0.000000e+00> : vector<8x32xf32>
    %143 = tpu.matmul %141, %142, %cst_47 {dimension_numbers = #tpu.dot_dimension_numbers<[0], [0], [1], [1], [0, 1, 1, 1], [], []>} : vector<64x8xbf16>, vector<64x32xbf16>, vector<8x32xf32> -> vector<8x32xf32>
    %144 = arith.addf %4, %143 : vector<8x32xf32>
    %c0_48 = arith.constant 0 : index
    %c0_49 = arith.constant 0 : index
    %c0_50 = arith.constant 0 : index
    %145 = vector.load %arg11[%c0_48, %c0_49, %c0_50] : memref<1x8x32xf32, #tpu.memory_space<vmem>>, vector<1x8x32xf32>
    %146 = vector.shape_cast %145 : vector<1x8x32xf32> to vector<8x32xf32>
    %147 = vector.shape_cast %144 : vector<8x32xf32> to vector<1x8x32xf32>
    tpu.vector_store %arg11[%c0_48, %c0_49, %c0_50], %147 {strides = array<i32>} : memref<1x8x32xf32, #tpu.memory_space<vmem>>, vector<1x8x32xf32>,
    return
  }
  func.func @transform_0(%arg0: i32, %arg1: i32) -> (i32, i32, i32) {
    %c0_i32 = arith.constant 0 : i32
    %c0_i32_0 = arith.constant 0 : i32
    return %arg0, %arg1, %c0_i32 : i32, i32, i32
  }
  func.func @transform_1(%arg0: i32, %arg1: i32) -> (i32, i32) {
    %c0_i32 = arith.constant 0 : i32
    %c0_i32_0 = arith.constant 0 : i32
    %c0_i32_1 = arith.constant 0 : i32
    return %c0_i32, %c0_i32_0 : i32, i32
  }
  func.func @transform_2(%arg0: i32, %arg1: i32) -> (i32, i32) {
    %c0_i32 = arith.constant 0 : i32
    %c0_i32_0 = arith.constant 0 : i32
    %c0_i32_1 = arith.constant 0 : i32
    return %c0_i32, %c0_i32_0 : i32, i32
  }
  func.func @transform_3(%arg0: i32, %arg1: i32) -> (i32, i32) {
    %c0_i32 = arith.constant 0 : i32
    %c0_i32_0 = arith.constant 0 : i32
    %c0_i32_1 = arith.constant 0 : i32
    return %c0_i32, %c0_i32_0 : i32, i32
  }
  func.func @transform_4(%arg0: i32, %arg1: i32) -> (i32, i32) {
    %c0_i32 = arith.constant 0 : i32
    %c0_i32_0 = arith.constant 0 : i32
    %c0_i32_1 = arith.constant 0 : i32
    return %c0_i32, %c0_i32_0 : i32, i32
  }
  func.func @transform_5(%arg0: i32, %arg1: i32) -> (i32, i32) {
    %c0_i32 = arith.constant 0 : i32
    %c0_i32_0 = arith.constant 0 : i32
    %c0_i32_1 = arith.constant 0 : i32
    return %c0_i32, %c0_i32_0 : i32, i32
  }
  func.func @transform_6(%arg0: i32, %arg1: i32) -> (i32, i32) {
    %c0_i32 = arith.constant 0 : i32
    %c0_i32_0 = arith.constant 0 : i32
    %c0_i32_1 = arith.constant 0 : i32
    return %c0_i32, %c0_i32_0 : i32, i32
  }
  func.func @transform_7(%arg0: i32, %arg1: i32) -> (i32, i32) {
    %c0_i32 = arith.constant 0 : i32
    %c0_i32_0 = arith.constant 0 : i32
    %c0_i32_1 = arith.constant 0 : i32
    return %c0_i32, %c0_i32_0 : i32, i32
  }
  func.func @transform_8(%arg0: i32, %arg1: i32) -> (i32, i32) {
    %c0_i32 = arith.constant 0 : i32
    %c0_i32_0 = arith.constant 0 : i32
    %c0_i32_1 = arith.constant 0 : i32
    return %c0_i32, %c0_i32_0 : i32, i32
  }
  func.func @transform_9(%arg0: i32, %arg1: i32) -> (i32, i32, i32) {
    %c0_i32 = arith.constant 0 : i32
    %c0_i32_0 = arith.constant 0 : i32
    return %arg0, %arg1, %c0_i32 : i32, i32, i32
  }
}

</mosaic_0001>

<bundles_post_ra>
// kernel: base_mamba_forward.2
= control target key start
LH: loop header
LB: loop body
LE: loop exit
PB: predicated region body
PF: predicated region fallthrough
CT: control target
= control target key end

     0   :  { %14 = vsyncpa [#allocation4], 0  ;;  %s2998_s0 = inlined_call_operand.vmem [shape: f32[2,16,32], index: 0, kind: input, shape index: {}]   ;;  %s2999_s1 = inlined_call_operand.vmem [shape: f32[1,32], index: 1, kind: input, shape index: {}]   ;;  %s3000_s2 = inlined_call_operand.hbm [shape: bf16[32,128], index: 2, kind: input, shape index: {}]   ;;  %s3001_s3 = inlined_call_operand.vmem [shape: bf16[32,32], index: 3, kind: input, shape index: {}]   ;;  %s3002_s4 = inlined_call_operand.vmem [shape: f32[32,4], index: 4, kind: input, shape index: {}]   ;;  %s3003_s5 = inlined_call_operand.hbm [shape: f32[4,1], index: 5, kind: input, shape index: {}]   ;;  %s3004_s6 = inlined_call_operand.vmem [shape: f32[64,1], index: 6, kind: input, shape index: {}, may-alias: {6,7}]   ;;  %s3005_s7 = inlined_call_operand.vmem [shape: f32[64,1], index: 7, kind: input, shape index: {}, may-alias: {6,7}]   ;;  %s3006_s8 = inlined_call_operand.vmem [shape: bf16[64,32], index: 8, kind: input, shape index: {}]   ;;  %s3007_s9 = inlined_call_operand.vmem [shape: f32[2,16,32], index: 9, kind: output, shape index: {}]  }
   0x1   :  { %15 = vsyncpa [#allocation6], 0  ;;  %s2442_s30 = smov 0   ;;  %s2444_s10 = smov 0  }
   0x2   :  { %s2446_s11 = smov 0   ;;  %s2448_s12 = smov 0  }
   0x3   :  { %s2450_s13 = smov 0  }
   0x4 LB: > { %3012 = sst [smem:[#allocation9_spill]] %s2372_s12  ;;  %s1952_s14 = sadd.s32 4294967295, %s2376_s13   ;;  %s2376_s13 = sphi %s2450_s13, %s21_s13   ;;  %s2372_s12 = sphi %s2448_s12, %s3022_s12   ;;  %s2368_s11 = sphi %s2446_s11, %s3024_s11   ;;  %s2364_s10 = sphi %s2444_s10, %s3020_s10   ;;  %s2360_s30 = sphi %s2442_s30, %s3023_s30  }
   0x5   : > { %s30_s15 = sadd.s32 1, %s2368_s11  ;;  %s33_s16 = sadd.s32 1, %s2372_s12 }
   0x6   : > { %p31_p0 = scmp.ge.s32.totalorder %s30_s15, 2  ;;  %p1954_p1 = scmp.ge.s32.totalorder %s2376_s13, 1 }
   0x7   : > { %p262_p2 = scmp.lt.s32.totalorder %s2376_s13, 5  ;;  %p2479_p5 = scmp.eq.s32.totalorder %s1952_s14, 0 }
   0x8   : > { %s3026_s15 = smov (%p31_p0, %s30_s15), 0  ;;  %s3028_s16 = smov (!%p31_p0, %s33_s16), %s2372_s12 }
   0x9   : > { %3013 = sst [smem:[#allocation10_spill]] %s3026_s15  ;;  %p2475_p3 = pnand %p1954_p1, %p262_p2 }
   0xa   : > { %p35_p4 = scmp.ge.s32.totalorder %s3028_s16, 2  ;;  %s2378_s19 = smov [#allocation3]  }
   0xb   : > { %s3014_s17 = scalar_select %p2475_p3, 1, 0 }
   0xc   : > { %s3015_s18 = scalar_select %p2479_p5, 1, 0 }
   0xd   : > { %p2145_p6 = pneg %p2475_p3  ;;  %s3030_s16 = smov (%p35_p4, %s3028_s16), 0 }
   0xe   : > { %3016 = sst [smem:[#allocation11_spill]] %s3030_s16  ;;  %s277_s20 = sshll.u32 %s2378_s19, 4  ;;  %s278_s20 = int_to_ptr.vmem [resolvable:$true] %s277_s20 }
   0xf   : > { %p2489_p7 = pnand %p2479_p5, %p2145_p6  ;;  %s2274_s24 = scalar_lea.hbm %s3000_s2, 256 }
  0x10   : > { %p2275_p8 = scmp.ne.s32.totalorder %s3000_s2, %s2274_s24  ;;  %p2281_p12 = scmp.lt.u32.totalorder %s2274_s24, %s3000_s2 }
  0x11   : > { %p2276_p9 = pneg %p2489_p7 }
  0x13   : > { %p2277_p10 = pnand %p2276_p9, %p2275_p8 }
  0x15   : > { %p2278_p11 = pneg %p2277_p10 }
  0x17   : > { %p2283_p13 = pnand %p2281_p12, %p2278_p11 }
  0x19   : > { %2286 = shalt.err (!%p2283_p13)
}
  0x1a   : > { %s2287_s29 = scalar_lea.vmem %s278_s20, 256  ;;  %p2295_p4 = scmp.lt.s32.totalorder %s278_s20, %s278_s20 }
  0x1b   : > { %p2288_p0 = scmp.ne.s32.totalorder %s278_s20, %s2287_s29  ;;  %p2296_p6 = scmp.lt.s32.totalorder %s2287_s29, %s2287_s29 }
  0x1d   : > { %p2290_p1 = pnand %p2288_p0, %p2276_p9  ;;  %p2297_p5 = por %p2296_p6, %p2295_p4 }
  0x1f   : > { %p2291_p2 = pneg %p2290_p1 }
  0x21   : > { %p2298_p3 = pnand %p2297_p5, %p2291_p2 }
  0x23   : > { %2301 = shalt.err (!%p2298_p3)
}
  0x24   : > { %s2379_s14 = smov 64   ;;  %s2380_s19 = smov 4  }
  0x25   : > { %2148 = dma.hbm_to_vmem [thread:$0]  (!%p2489_p7), %s3000_s2, 256, %s278_s20, [#allocation4], %s2379_s14, %s2379_s14, %s2380_s19  }
  0x26   : > { %s2381_s24 = smov [#allocation5]   ;;  %s2302_s28 = scalar_lea.hbm %s3003_s5, 64 }
  0x27   : > { %s297_s25 = sshll.u32 %s2381_s24, 4  ;;  %p2303_p3 = scmp.ne.s32.totalorder %s3003_s5, %s2302_s28  ;;  %s298_s25 = int_to_ptr.vmem [resolvable:$true] %s297_s25 }
  0x28   : > { %p2309_p10 = scmp.lt.u32.totalorder %s2302_s28, %s3003_s5 }
  0x29   : > { %p2305_p5 = pnand %p2303_p3, %p2276_p9 }
  0x2b   : > { %p2306_p8 = pneg %p2305_p5 }
  0x2d   : > { %p2311_p11 = pnand %p2309_p10, %p2306_p8 }
  0x2f   : > { %2314 = shalt.err (!%p2311_p11)
}
  0x30   : > { %s2315_s20 = scalar_lea.vmem %s298_s25, 64  ;;  %p2323_p1 = scmp.lt.s32.totalorder %s298_s25, %s298_s25 }
  0x31   : > { %p2316_p12 = scmp.ne.s32.totalorder %s298_s25, %s2315_s20  ;;  %p2324_p2 = scmp.lt.s32.totalorder %s2315_s20, %s2315_s20 }
  0x33   : > { %p2318_p13 = pnand %p2316_p12, %p2276_p9  ;;  %p2325_p4 = por %p2324_p2, %p2323_p1 }
  0x35   : > { %p2319_p0 = pneg %p2318_p13 }
  0x37   : > { %p2326_p6 = pnand %p2325_p4, %p2319_p0 }
  0x39   : > { %2329 = shalt.err (!%p2326_p6)
}
  0x3a   : > { %2151 = dma.hbm_to_vmem [thread:$0]  (!%p2489_p7), %s3003_s5, 64, %s298_s25, [#allocation6]  }
  0x3b   : > { %p3018_p3 = scmp.ne.s32.totalorder %s3014_s17, 0 }
  0x3c   : > { %p3019_p5 = scmp.ne.s32.totalorder (!%p3018_p3), %s3015_s18, 0 }
  0x3d   : > { %330 = sbr.rel (%p3018_p3) target bundleno = 1595 (0x63b), region = 56 }
  0x44   : > { %2351 = dma.done.wait (%p3019_p5), [#allocation4], 256  }
  0x45   : > { %2353 = vsyncadd (%p3019_p5), [#allocation4], 4294967040 }
  0x46   : > { %2355 = dma.done.wait (%p3019_p5), [#allocation6], 64  }
  0x47   : > { %2357 = vsyncadd (%p3019_p5), [#allocation6], 4294967232  ;;  %p376_p7 = scmp.lt.s32.totalorder %s2364_s10, 1  ;;  %p378_p9 = scmp.lt.s32.totalorder %s2360_s30, 1 }
  0x48   : > { %p1965_p8 = scmp.ne.s32.totalorder %s2360_s30, 0 }
  0x49   : > { %s3032_s10 = smov (!%p376_p7, %s2364_s10), 1  ;;  %vm397_vm0 = vcmask (!%p1965_p8), 130048   ;;  %v2382_v0 = vmov (!%p1965_p8), 0.0  }
  0x4a   : > { %s379_s12 = scalar_select %p378_p9, %s2360_s30, 1 }
  0x4b   : > { %s1961_s15 = sshll.u32 %s3032_s10, 1  ;;  %396 = sbr.rel (%p1965_p8) target bundleno = 82 (0x52), region = 68  ;;  %398 = vst.msk [vmem:[#allocation2] sm:$0xff] (!%p1965_p8), %vm397_vm0, %v2382_v0  ;;  %399 = vst.msk [vmem:[#allocation2 + $0x8] sm:$0xff] (!%p1965_p8), %vm397_vm0, %v2382_v0 }
  0x4c   : > { %s381_s17 = sadd.s32 %s1961_s15, %s379_s12  ;;  %400 = vst.msk [vmem:[#allocation2 + $0x10] sm:$0xff] (!%p1965_p8), %vm397_vm0, %v2382_v0  ;;  %401 = vst.msk [vmem:[#allocation2 + $0x18] sm:$0xff] (!%p1965_p8), %vm397_vm0, %v2382_v0 }
  0x4d   : > { %s1962_s21 = sshll.u32 %s381_s17, 3  ;;  %402 = vst.msk [vmem:[#allocation2 + $0x20] sm:$0xff] (!%p1965_p8), %vm397_vm0, %v2382_v0  ;;  %403 = vst.msk [vmem:[#allocation2 + $0x28] sm:$0xff] (!%p1965_p8), %vm397_vm0, %v2382_v0 }
  0x4e   : > { %s2552_s23 = scalar_lea.vmem %s2998_s0, %s1962_s21  ;;  %s2557_s18 = scalar_lea.vmem %s3007_s9, %s1962_s21  ;;  %404 = vst.msk [vmem:[#allocation2 + $0x30] sm:$0xff] (!%p1965_p8), %vm397_vm0, %v2382_v0  ;;  %405 = vst.msk [vmem:[#allocation2 + $0x38] sm:$0xff] (!%p1965_p8), %vm397_vm0, %v2382_v0 }
  0x52 PF: > { %v406_v1 = vld [vmem:[%s2552_s23] sm:$0xff]  ;;  %vm408_vm1 = vcmask 261120   ;;  %v2383_v5 = vmov 0.0   ;;  %vm2384_vm2 = vmmov 0   ;;  %v2214_v6 = vld [vmem:[%s3001_s3 + $0x8] sm:$0xff]   ;;  %v2385_v10 = vmov 0  }
  0x53   : > { %v407_v2 = vmul.f32 %v406_v1, %v406_v1  ;;  %v2213_v4 = vld [vmem:[%s3001_s3] sm:$0xff]   ;;  %2059 = vmatprep.subr.bf16.mxu1 %v2383_v5  ;;  %2063 = vmatprep.mubr.msk.bf16.mxu1 %vm2384_vm2, %v2383_v5  ;;  %v639_v8 = vld [vmem:[%s3002_s4 + $0x8] sm:$0xff]  ;;  %v758_v9 = vld [vmem:[#allocation5] sm:$0xf]  ;;  %vm903_vm3 = vcmask 130048   ;;  %s2386_s22 = smov 112  }
  0x54   : > { %2060 = vmatpush3.bf16.msra.mxu1 %v2213_v4  ;;  %v638_v7 = vld [vmem:[%s3002_s4] sm:$0xff]  ;;  %2210 = vset.pattern.permute.xlu1 %v2385_v10  ;;  %v640_v11 = vld [vmem:[%s3002_s4 + $0x10] sm:$0xff]  ;;  %v641_v12 = vld [vmem:[%s3002_s4 + $0x18] sm:$0xff]  ;;  %s2387_s24 = smov 1   ;;  %vm769_vm5 = vcmask 7168   ;;  %s2388_s25 = smov 2  }
  0x55   : > { %v409_v3 = vsel %vm408_vm1, %v407_v2, 0.0  ;;  %2061 = vmatprep.subr.bf16.mxu1 %v2383_v5  ;;  %761 = vperm.xlu1 %2210, %v758_v9   ;;  %v2215_v13 = vld [vmem:[#allocation3] sm:$0xff]   ;;  %v2216_v14 = vld [vmem:[#allocation3 + $0x8] sm:$0xff]   ;;  %v2625_v55 = vld [vmem:[#allocation2 + $0x10] sm:$0xff]  ;;  %vm776_vm6 = vcmask 15360   ;;  %s2389_s20 = smov 4  }
  0x56   : > { %410 = vadd.xlane.f32.xlu0 %v409_v3  ;;  %v1966_v19 = vld [vmem:[%s2999_s1] ss:$0 sm:$0xff]  ;;  %v2614_v47 = vld [vmem:[#allocation2 + $0x8] sm:$0xff]  ;;  %v2627_v56 = vld [vmem:[#allocation2 + $0x18] sm:$0xff]  ;;  %vm783_vm7 = vcmask 31744   ;;  %vm1191_vm9 = vcmask 64512  }
  0x57   : > { %v2612_v46 = vld [vmem:[#allocation2] sm:$0xff]  ;;  %v2633_v58 = vld [vmem:[#allocation2 + $0x28] sm:$0xff]  ;;  %v896_v59 = vpack.c.bf16 %v2627_v56, %v2625_v55  ;;  %v2642_v61 = vld [vmem:[#allocation2 + $0x30] sm:$0xff]  ;;  %vm1500_vm10 = vcmask 1043456   ;;  %vm1797_vm11 = vcmask 523264  }
  0x58   : > { %2062 = vmatpush3.bf16.msra.mxu1 %v2214_v6  ;;  %v895_v48 = vpack.c.bf16 %v2614_v47, %v2612_v46  ;;  %v2631_v57 = vld [vmem:[#allocation2 + $0x20] sm:$0xff]  ;;  %v2644_v62 = vld [vmem:[#allocation2 + $0x38] sm:$0xff] }
  0x59   : > { %2067 = vmatprep.subr.mxu1 %v2383_v5  ;;  %v897_v60 = vpack.c.bf16 %v2633_v58, %v2631_v57  ;;  %v898_v63 = vpack.c.bf16 %v2644_v62, %v2642_v61 }
  0x78   : > { %442 = vxpose.xlu1.c.b16.start [1/2] (short) %v2215_v13, 128 }
  0x7c   : > { %443 = vxpose.xlu1.c.b16.end [2/2] (short) %v2216_v14, 128 }
  0x83   : > { %642 = vxpose.xlu0.b32.start [1/4] (short) (narrow) %v638_v7, 8 }
  0x87   : > { %643 = vxpose.xlu0.b32.cont [2/4] (short) (narrow) %v639_v8, 8 }
  0x8b   : > { %644 = vxpose.xlu0.b32.cont [3/4] (short) (narrow) %v640_v11, 8 }
  0x8f   : > { %645 = vxpose.xlu0.b32.end [4/4] (short) (narrow) %v641_v12, 8 }
  0xb8   : > { %2211 = vset.pattern.permute.xlu0 %v2385_v10 }
  0xd4   : > { %v762_v25 = vpop.permute.xlu1 %761 }
  0xde   : > { %v450_v26 = vpop.trf.xlu1 }
  0xdf   : > { %2043 = vmatprep.mubr.msk.bf16.mxu0 %vm408_vm1, %v450_v26  ;;  %v1395_v26 = vld [vmem:[%s3004_s6 + $0x38] sm:$0xff] }
  0xe2   : > { %v451_v27 = vpop.trf.xlu1 }
  0xe3   : > { %v411_v15 = vpop.xlane.xlu0 %410 }
  0xe4   : > { %v413_v16 = vmul.f32 0.03125, %v411_v15 }
  0xe6   : > { %v414_v17 = vadd.f32 1e-05, %v413_v16  ;;  %v452_v28 = vpop.trf.xlu1 }
  0xe8   : > { %2221 = vrsqrt.f32 %v414_v17 }
  0xea   : > { %v453_v29 = vpop.trf.xlu1 }
  0xee   : > { %v454_v30 = vpop.trf.xlu1 }
  0xf2   : > { %v2222_v18 = vpop.eup %2221  ;;  %v455_v31 = vpop.trf.xlu1 }
  0xf3   : > { %v416_v20 = vmul.f32 %v2222_v18, %v406_v1 }
  0xf5   : > { %v424_v21 = vmul.f32 %v1966_v19, %v416_v20 }
  0xf6   : > { %v456_v32 = vpop.trf.xlu1 }
  0xf7   : > { %v425_v22 = vpack.c.bf16 %v424_v21, %v424_v21 }
  0xf9   : > { %2134 = vmatprep.subr.msk.bf16.mxu0 %vm408_vm1, %v425_v22  ;;  %2064 = vmatmul.mubr.msk.bf16.vlgmr.msra.gmra.mrb[0].mxu1 %vm408_vm1, %v425_v22  ;;  %v483_v23 = vsel %vm408_vm1, %v425_v22, 0 }
  0xfa   : > { %2068 = vmatpush3.xpose.msk.msra.mxu1 %vm408_vm1, %v424_v21  ;;  %2042 = vmatpush3.bf16.xpose.msra.mxu0 %v483_v23  ;;  %v457_v33 = vpop.trf.xlu1 }
  0xfb   : > { %2069 = vmatprep.mubr.msk.f32.mxu1 %vm2384_vm2, %v2383_v5  ;;  %2082 = vmatprep.subr.bf16.mxu0 %v2383_v5 }
 0x101   : > { %2044 = vmatmul.mubr.msk.bf16.vlgmr.msra.gmra.mrb[0].mxu0 %vm408_vm1, %v451_v27 }
 0x102   : > { %2047 = vmatprep.mubr.msk.bf16.mxu0 %vm408_vm1, %v452_v28 }
 0x103   : > { %v658_v24 = vpop.trf.xlu0 }
 0x104   : > { %2070 = vmatmul.mubr.msk.f32.vlgmr.msra.gmra.mrb[4].mxu1 %vm408_vm1, %v658_v24  ;;  %v1390_v24 = vld [vmem:[%s3004_s6 + $0x10] sm:$0xff] }
 0x105   : > { %2074 = vmatprep.mubr.msk.bf16.mxu1 %vm903_vm3, %v895_v48 }
 0x109   : > { %2048 = vmatmul.mubr.msk.bf16.gmra.mrb[4].mxu0 %vm408_vm1, %v453_v29 }
 0x10a   : > { %2051 = vmatprep.mubr.msk.bf16.mxu0 %vm408_vm1, %v454_v30 }
 0x111   : > { %2052 = vmatmul.mubr.msk.bf16.gmra.mrb[8].mxu0 %vm408_vm1, %v455_v31 }
 0x112   : > { %2055 = vmatprep.mubr.msk.bf16.mxu0 %vm408_vm1, %v456_v32 }
 0x119   : > { %2056 = vmatmul.mubr.msk.bf16.gmra.mrb[12].mxu0 %vm408_vm1, %v457_v33 }
 0x11a   : > { %2084 = vmatprep.mubr.msk.bf16.mxu0 %vm2384_vm2, %v2383_v5 }
 0x1cc   : > { %v632_v34 = vpop.f32.mrb[0].mxu1 }
 0x1cd   : > { %v2606_v35 = vpack.c.bf16 %v632_v34, %v632_v34  ;;  %v2065_v36 = vpop.f32.mrb[1].mxu1 }
 0x1ce   : > { %v635_v37 = vpop.f32.mrb[2].mxu1 }
 0x1cf   : > { %901 = vrot.lane.b32.xlu1 %v2606_v35, %s2386_s22  ;;  %v2066_v38 = vpop.f32.mrb[3].mxu1  ;;  %v993_v39 = vsel %vm903_vm3, %v2606_v35, 0 }
 0x1d0   : > { %2083 = vmatpush3.bf16.xpose.msra.mxu0 %v993_v39 }
 0x1d1   : > { %2094 = vmatprep.subr.bf16.mxu0 %v2383_v5 }
 0x1d4   : > { %v2651_v0 = vpop.f32.mrb[0].mxu0 }
 0x1d5   : > { %v2653_v1 = vpop.f32.mrb[1].mxu0 }
 0x1d6   : > { %v2655_v2 = vpop.f32.mrb[2].mxu0 }
 0x1d7   : > { %v746_v40 = vpop.f32.mrb[4].mxu1  ;;  %v2657_v3 = vpop.f32.mrb[3].mxu0 }
 0x1d8   : > { %v750_v41 = vmin.f32 %v746_v40, 20.0  ;;  %v2071_v42 = vpop.f32.mrb[5].mxu1  ;;  %vm751_vm4 = vcmp.gt.f32.partialorder %v746_v40, 20.0 }
 0x1da   : > { %v752_v43 = vmul.f32 1.442695, %v750_v41 }
 0x1dc   : > { %2223 = vpow2.f32 %v752_v43  ;;  %v2659_v4 = vpop.f32.mrb[4].mxu0  ;;  %v800_v43 = vlaneseq }
 0x1dd   : > { %v2661_v6 = vpop.f32.mrb[5].mxu0 }
 0x1de   : > { %v2663_v8 = vpop.f32.mrb[6].mxu0 }
 0x1df   : > { %v2665_v10 = vpop.f32.mrb[7].mxu0 }
 0x1e4   : > { %v2667_v12 = vpop.f32.mrb[8].mxu0 }
 0x1e5   : > { %v2669_v13 = vpop.f32.mrb[9].mxu0 }
 0x1e6   : > { %v2224_v44 = vpop.eup %2223  ;;  %v2671_v14 = vpop.f32.mrb[10].mxu0 }
 0x1e7   : > { %v754_v45 = vadd.f32 1.0, %v2224_v44  ;;  %v1188_v15 = vpack.c.bf16 %v2671_v14, %v2667_v12  ;;  %v2675_v16 = vpop.f32.mrb[11].mxu0  ;;  %v2703_v44 = vshrl.u32 %v800_v43, 7 }
 0x1e8   : > { %v1187_v17 = vpack.c.bf16 %v2675_v16, %v2669_v13 }
 0x1e9   : > { %2225 = vlog2.f32 %v754_v45 }
 0x1ec   : > { %v2679_v18 = vpop.f32.mrb[12].mxu0 }
 0x1ed   : > { %v2681_v19 = vpop.f32.mrb[13].mxu0 }
 0x1ee   : > { %v2683_v20 = vpop.f32.mrb[14].mxu0 }
 0x1ef   : > { %v1190_v21 = vpack.c.bf16 %v2683_v20, %v2679_v18  ;;  %v2687_v22 = vpop.f32.mrb[15].mxu0 }
 0x1f0   : > { %v1189_v23 = vpack.c.bf16 %v2687_v22, %v2681_v19 }
 0x1f3   : > { %v2226_v49 = vpop.eup %2225 }
 0x1f4   : > { %v756_v50 = vmul.f32 0.6931472, %v2226_v49 }
 0x1f6   : > { %v2619_v51 = vsel %vm751_vm4, %v746_v40, %v756_v50  ;;  %v2708_v50 = vsub.s32 0, %v2703_v44 }
 0x1f7   : > { %v764_v52 = vmul.f32 %v762_v25, %v2619_v51  ;;  %v1393_v25 = vld [vmem:[%s3004_s6 + $0x28] sm:$0xff] }
 0x1f9   : > { %766 = vrot.lane.b32.xlu0 %v764_v52, %s2387_s24 }
 0x1fd   : > { %1408 = vperm.xlu0 %2211, %v1390_v24   ;;  %v1063_v24 = vsub.s32 3, %v2703_v44 }
 0x201   : > { %1423 = vperm.xlu0 %2211, %v1393_v25  }
 0x205   : > { %1433 = vperm.xlu0 %2211, %v1395_v26  }
 0x241   : > { %v902_v53 = vpop.permute.xlu1 %901 }
 0x242   : > { %2135 = vmatprep.subr.msk.bf16.mxu1 %vm903_vm3, %v902_v53  ;;  %2085 = vmatmul.mubr.msk.bf16.vlgmr.msra.gmra.mrb[16].mxu0 %vm903_vm3, %v902_v53  ;;  %v917_v54 = vsel %vm903_vm3, %v902_v53, 0  ;;  %v1049_v53 = vsub.s32 1, %v2703_v44 }
 0x243   : > { %2073 = vmatpush3.bf16.xpose.msra.mxu1 %v917_v54  ;;  %2096 = vmatprep.mubr.msk.bf16.mxu0 %vm2384_vm2, %v2383_v5 }
 0x244   : > { %2088 = vmatprep.subr.bf16.mxu1 %v2383_v5 }
 0x24a   : > { %2075 = vmatmul.mubr.msk.bf16.vlgmr.msra.gmra.mrb[8].mxu1 %vm903_vm3, %v896_v59  ;;  %v2390_v59 = vmov 1966171168  }
 0x24b   : > { %2078 = vmatprep.mubr.msk.bf16.mxu1 %vm903_vm3, %v897_v60  ;;  %v798_v60 = vunpack.c.l.s4 %v2390_v59 }
 0x252   : > { %2079 = vmatmul.mubr.msk.bf16.gmra.mrb[12].mxu1 %vm903_vm3, %v898_v63 }
 0x253   : > { %2090 = vmatprep.mubr.msk.bf16.mxu1 %vm2384_vm2, %v2383_v5 }
 0x26b   : > { %v767_v7 = vpop.permute.xlu0 %766 }
 0x26c   : > { %v770_v9 = vsel %vm769_vm5, 0.0, %v767_v7  ;;  %v1056_v7 = vsub.s32 2, %v2703_v44 }
 0x26d   : > { %v771_v11 = vadd.f32 %v770_v9, %v764_v52  ;;  %v799_v9 = vunpack.c.0.s8 %v798_v60  ;;  %v1389_v60 = vld [vmem:[%s3004_s6 + $0x8] sm:$0xff] }
 0x26f   : > { %773 = vrot.lane.b32.xlu1 %v771_v11, %s2388_s25  ;;  %v2719_v25 = vsub.s32 %v799_v9, %v2703_v44 }
 0x2e1   : > { %v774_v27 = vpop.permute.xlu1 %773 }
 0x2e2   : > { %v777_v28 = vsel %vm776_vm6, 0.0, %v774_v27 }
 0x2e3   : > { %v778_v29 = vadd.f32 %v777_v28, %v771_v11 }
 0x2e5   : > { %780 = vrot.lane.b32.xlu1 %v778_v29, %s2389_s20 }
 0x315   : > { %v2700_v30 = vpop.f32.mrb[16].mxu0 }
 0x316   : > { %v2086_v31 = vpop.f32.mrb[17].mxu0 }
 0x317   : > { %v1032_v32 = vpop.f32.mrb[18].mxu0 }
 0x318   : > { %v2087_v33 = vpop.f32.mrb[19].mxu0  ;;  %v1388_v32 = vld [vmem:[%s3004_s6] sm:$0xff] }
 0x31d   : > { %v2076_v34 = vpop.f32.mrb[8].mxu1 }
 0x31e   : > { %v953_v36 = vpop.f32.mrb[9].mxu1 }
 0x31f   : > { %v2077_v37 = vpop.f32.mrb[10].mxu1 }
 0x320   : > { %v956_v38 = vpop.f32.mrb[11].mxu1 }
 0x325   : > { %v2080_v39 = vpop.f32.mrb[12].mxu1 }
 0x326   : > { %v969_v40 = vpop.f32.mrb[13].mxu1 }
 0x327   : > { %v2081_v41 = vpop.f32.mrb[14].mxu1 }
 0x328   : > { %v972_v42 = vpop.f32.mrb[15].mxu1 }
 0x357   : > { %v781_v45 = vpop.permute.xlu1 %780 }
 0x358   : > { %v784_v48 = vsel %vm783_vm7, 0.0, %v781_v45 }
 0x359   : > { %v2705_v49 = vadd.f32 %v784_v48, %v778_v29 }
 0x35b   : > { %v1043_v52 = vrot.slane %v2705_v49, %v2708_v50  ;;  %v786_v54 = vmul.f32 1.442695, %v2705_v49  ;;  %v1050_v63 = vrot.slane %v2705_v49, %v1049_v53  ;;  %v1057_v11 = vrot.slane %v2705_v49, %v1056_v7 }
 0x35c   : > { %v1064_v27 = vrot.slane %v2705_v49, %v1063_v24 }
 0x35d   : > { %1045 = vbcast.lane.b32.xlu1 %v1043_v52, 256  ;;  %2227 = vpow2.f32 %v786_v54 }
 0x361   : > { %1052 = vbcast.lane.b32.xlu1 %v1050_v63, 256 }
 0x365   : > { %1059 = vbcast.lane.b32.xlu1 %v1057_v11, 256 }
 0x367   : > { %v2228_v26 = vpop.eup %2227 }
 0x368   : > { %v803_v28 = vrot.slane %v2228_v26, %v2719_v25 }
 0x369   : > { %1066 = vbcast.lane.b32.xlu1 %v1064_v27, 256  ;;  %v1391_v27 = vld [vmem:[%s3004_s6 + $0x18] sm:$0xff] }
 0x36a   : > { %v804_v29 = vcombine.high %v803_v28, %v803_v28  ;;  %v811_v31 = vrot.slane %v803_v28, %v2719_v25  ;;  %v2391_v28 = vmov 7  }
 0x36c   : > { %v818_v33 = vrot.slane %v804_v29, %v2719_v25  ;;  %v824_v45 = vrot.slane %v811_v31, %v2708_v50  ;;  %v819_v48 = vcombine.high %v811_v31, %v811_v31  ;;  %v1690_v29 = vld [vmem:[%s3005_s7 + $0x8] sm:$0xff]  ;;  %v1692_v31 = vld [vmem:[%s3005_s7 + $0x18] sm:$0xff] }
 0x36d   : > { %1398 = vperm.xlu1 %2210, %v1388_v32   ;;  %1704 = vperm.xlu0 %2211, %v1690_v29   ;;  %v1694_v32 = vld [vmem:[%s3005_s7 + $0x28] sm:$0xff] }
 0x36e   : > { %v828_v52 = vrot.slane %v818_v33, %v2708_v50  ;;  %v2730_v53 = vmul.f32 %v953_v36, %v824_v45  ;;  %v2732_v54 = vmul.f32 %v956_v38, %v824_v45  ;;  %v820_v59 = vcombine.high %v818_v33, %v818_v33  ;;  %v1696_v33 = vld [vmem:[%s3005_s7 + $0x38] sm:$0xff] }
 0x36f   : > { %v832_v63 = vrot.slane %v819_v48, %v2708_v50 }
 0x370   : > { %v2738_v7 = vmul.f32 %v2076_v34, %v828_v52  ;;  %v2740_v9 = vmul.f32 %v2077_v37, %v828_v52  ;;  %v836_v11 = vrot.slane %v820_v59, %v2708_v50  ;;  %v1392_v34 = vld [vmem:[%s3004_s6 + $0x20] sm:$0xff]  ;;  %v1394_v37 = vld [vmem:[%s3004_s6 + $0x30] sm:$0xff]  ;;  %v1038_v59 = vand.u32 127, %v800_v43 }
 0x371   : > { %v2743_v24 = vmul.f32 %v969_v40, %v832_v63  ;;  %v2745_v26 = vmul.f32 %v972_v42, %v832_v63  ;;  %1403 = vperm.xlu1 %2210, %v1389_v60   ;;  %v1691_v40 = vld [vmem:[%s3005_s7 + $0x10] sm:$0xff]  ;;  %1714 = vperm.xlu0 %2211, %v1692_v31  }
 0x372   : > { %v2747_v36 = vmul.f32 %v2080_v39, %v836_v11  ;;  %v2749_v38 = vmul.f32 %v2081_v41, %v836_v11  ;;  %v1689_v39 = vld [vmem:[%s3005_s7] sm:$0xff]  ;;  %v1695_v42 = vld [vmem:[%s3005_s7 + $0x30] sm:$0xff]  ;;  %vm1039_vm8 = vcmp.ge.s32.totalorder %v2703_v44, %v1038_v59 }
 0x373   : > { %v1693_v41 = vld [vmem:[%s3005_s7 + $0x20] sm:$0xff] }
 0x375   : > { %1413 = vperm.xlu1 %2210, %v1391_v27   ;;  %1724 = vperm.xlu0 %2211, %v1694_v32  }
 0x379   : > { %1418 = vperm.xlu1 %2210, %v1392_v34   ;;  %1734 = vperm.xlu0 %2211, %v1696_v33   ;;  %v1141_v33 = vrot.slane %v2619_v51, %v2719_v25 }
 0x37d   : > { %1428 = vperm.xlu1 %2210, %v1394_v37  }
 0x381   : > { %1699 = vperm.xlu1 %2210, %v1689_v39  }
 0x385   : > { %1709 = vperm.xlu1 %2210, %v1691_v40  }
 0x389   : > { %1719 = vperm.xlu1 %2210, %v1693_v41  }
 0x38d   : > { %1729 = vperm.xlu1 %2210, %v1695_v42  }
 0x391   : > { %2212 = vset.pattern.permute.xlu1 %v2391_v28 }
 0x392   : > { %790 = vperm.xlu1 %2212, %v2705_v49  }
 0x396   : > { %1453 = vperm.xlu1 %2212, %v824_v45   ;;  %v1074_v45 = vrot.slane %v2705_v49, %v2719_v25 }
 0x398   : > { %v1082_v48 = vrot.slane %v1074_v45, %v2719_v25 }
 0x39a   : > { %1457 = vperm.xlu1 %2212, %v828_v52   ;;  %v1075_v52 = vcombine.high %v1074_v45, %v1074_v45  ;;  %v1095_v60 = vrot.slane %v1082_v48, %v2708_v50  ;;  %v1090_v39 = vcombine.high %v1082_v48, %v1082_v48 }
 0x39c   : > { %v1103_v28 = vrot.slane %v1090_v39, %v2708_v50 }
 0x39e   : > { %1461 = vperm.xlu1 %2212, %v832_v63   ;;  %v1089_v63 = vrot.slane %v1075_v52, %v2719_v25 }
 0x3a0   : > { %v1099_v37 = vrot.slane %v1089_v63, %v2708_v50  ;;  %v1091_v29 = vcombine.high %v1089_v63, %v1089_v63 }
 0x3a2   : > { %1465 = vperm.xlu1 %2212, %v836_v11   ;;  %v1107_v52 = vrot.slane %v1091_v29, %v2708_v50 }
 0x3cf   : > { %v1046_v11 = vpop.permute.xlu1 %1045 }
 0x3d0   : > { %v1112_v27 = vsub.f32 %v1046_v11, %v1095_v60 }
 0x3d2   : > { %v1118_v34 = vsel %vm1039_vm8, %v1112_v27, -1e+30  ;;  %v1142_v27 = vcombine.high %v1141_v33, %v1141_v33 }
 0x3d3   : > { %v1122_v40 = vmul.f32 1.442695, %v1118_v34  ;;  %v1053_v41 = vpop.permute.xlu1 %1052  ;;  %v1149_v34 = vrot.slane %v1141_v33, %v2719_v25 }
 0x3d4   : > { %v1113_v42 = vsub.f32 %v1053_v41, %v1099_v37  ;;  %v1156_v41 = vrot.slane %v1142_v27, %v2719_v25 }
 0x3d5   : > { %2229 = vpow2.f32 %v1122_v40 }
 0x3d6   : > { %v1119_v43 = vsel %vm1039_vm8, %v1113_v42, -1e+30  ;;  %v1158_v27 = vcombine.high %v1156_v41, %v1156_v41 }
 0x3d7   : > { %v1124_v31 = vmul.f32 1.442695, %v1119_v43  ;;  %v1060_v32 = vpop.permute.xlu1 %1059  ;;  %v1162_v43 = vrot.slane %v1149_v34, %v2708_v50 }
 0x3d8   : > { %v1114_v45 = vsub.f32 %v1060_v32, %v1103_v28 }
 0x3d9   : > { %2231 = vpow2.f32 %v1124_v31  ;;  %v1157_v31 = vcombine.high %v1149_v34, %v1149_v34 }
 0x3da   : > { %v1120_v48 = vsel %vm1039_vm8, %v1114_v45, -1e+30  ;;  %v1166_v45 = vrot.slane %v1156_v41, %v2708_v50 }
 0x3db   : > { %v1126_v60 = vmul.f32 1.442695, %v1120_v48  ;;  %v1067_v11 = vpop.permute.xlu1 %1066 }
 0x3dc   : > { %v1115_v37 = vsub.f32 %v1067_v11, %v1107_v52  ;;  %v1170_v11 = vrot.slane %v1157_v31, %v2708_v50 }
 0x3dd   : > { %2233 = vpow2.f32 %v1126_v60 }
 0x3de   : > { %v1121_v63 = vsel %vm1039_vm8, %v1115_v37, -1e+30 }
 0x3df   : > { %v2230_v39 = vpop.eup %2229  ;;  %v1128_v40 = vmul.f32 1.442695, %v1121_v63 }
 0x3e0   : > { %v1130_v42 = vmul.f32 %v2230_v39, %v2700_v30 }
 0x3e1   : > { %2235 = vpow2.f32 %v1128_v40 }
 0x3e2   : > { %v1179_v28 = vmul.f32 %v1162_v43, %v1130_v42  ;;  %v1174_v43 = vrot.slane %v1158_v27, %v2708_v50 }
 0x3e3   : > { %v2232_v29 = vpop.eup %2231 }
 0x3e4   : > { %v1183_v32 = vpack.c.bf16 %v1179_v28, %v1179_v28  ;;  %v1131_v33 = vmul.f32 %v2232_v29, %v2700_v30 }
 0x3e6   : > { %v1196_v44 = vsel %vm1191_vm9, %v1183_v32, 0  ;;  %v1180_v59 = vmul.f32 %v1166_v45, %v1131_v33 }
 0x3e7   : > { %v2234_v48 = vpop.eup %2233  ;;  %2089 = vmatpush3.bf16.xpose.msra.mxu1 %v1196_v44  ;;  %v1501_v44 = vsel %vm1500_vm10, %v2606_v35, 0 }
 0x3e8   : > { %v1184_v52 = vpack.c.bf16 %v1180_v59, %v1180_v59  ;;  %2100 = vmatprep.subr.bf16.mxu1 %v2383_v5  ;;  %v1132_v60 = vmul.f32 %v2234_v48, %v2700_v30 }
 0x3ea   : > { %v1243_v34 = vsel %vm1191_vm9, %v1184_v52, 0  ;;  %v1181_v37 = vmul.f32 %v1170_v11, %v1132_v60 }
 0x3eb   : > { %v2236_v63 = vpop.eup %2235  ;;  %2095 = vmatpush3.bf16.xpose.msra.mxu0 %v1243_v34 }
 0x3ec   : > { %v1399_v39 = vpop.permute.xlu1 %1398  ;;  %v1185_v40 = vpack.c.bf16 %v1181_v37, %v1181_v37  ;;  %2106 = vmatprep.subr.bf16.mxu0 %v2383_v5  ;;  %v1133_v42 = vmul.f32 %v2236_v63, %v2700_v30 }
 0x3ed   : > { %v2820_v28 = vmul.f32 %v1399_v39, %v2669_v13 }
 0x3ee   : > { %2091 = vmatmul.mubr.msk.bf16.vlgmr.msra.gmra.mrb[16].mxu1 %vm1191_vm9, %v1187_v17  ;;  %v1290_v41 = vsel %vm1191_vm9, %v1185_v40, 0  ;;  %v1182_v29 = vmul.f32 %v1174_v43, %v1133_v42 }
 0x3ef   : > { %2101 = vmatpush3.bf16.xpose.msra.mxu1 %v1290_v41  ;;  %2102 = vmatprep.mubr.msk.bf16.mxu1 %vm2384_vm2, %v2383_v5 }
 0x3f0   : > { %2136 = vmatprep.subr.msk.bf16.mxu1 %vm1500_vm10, %v2606_v35  ;;  %v1404_v30 = vpop.permute.xlu1 %1403  ;;  %v1186_v31 = vpack.c.bf16 %v1182_v29, %v1182_v29 }
 0x3f1   : > { %v2831_v32 = vmul.f32 %v1404_v30, %v2675_v16 }
 0x3f2   : > { %2097 = vmatmul.mubr.msk.bf16.vlgmr.msra.gmra.mrb[20].mxu0 %vm1191_vm9, %v1188_v15  ;;  %v1337_v17 = vsel %vm1191_vm9, %v1186_v31, 0 }
 0x3f3   : > { %2107 = vmatpush3.bf16.xpose.msra.mxu0 %v1337_v17  ;;  %2108 = vmatprep.mubr.msk.bf16.mxu0 %vm2384_vm2, %v2383_v5 }
 0x3f4   : > { %v1414_v33 = vpop.permute.xlu1 %1413  ;;  %2122 = vmatprep.subr.bf16.mxu0 %v2383_v5 }
 0x3f5   : > { %v2842_v45 = vmul.f32 %v2671_v14, %v1414_v33 }
 0x3f6   : > { %2103 = vmatmul.mubr.msk.bf16.vlgmr.msra.gmra.mrb[20].mxu1 %vm1191_vm9, %v1189_v23 }
 0x3f7   : > { %2113 = vmatpush3.bf16.msra.mxu1 %v1501_v44 }
 0x3f8   : > { %v1419_v15 = vpop.permute.xlu1 %1418 }
 0x3f9   : > { %v2850_v59 = vmul.f32 %v1419_v15, %v2681_v19 }
 0x3fa   : > { %2109 = vmatmul.mubr.msk.bf16.vlgmr.msra.gmra.mrb[24].mxu0 %vm1191_vm9, %v1190_v21 }
 0x3fb   : > { %2130 = vmatprep.mubr.msk.bf16.mxu0 %vm2384_vm2, %v2383_v5 }
 0x3fc   : > { %v1429_v48 = vpop.permute.xlu1 %1428 }
 0x3fd   : > { %v2859_v52 = vmul.f32 %v2679_v18, %v1429_v48 }
 0x400   : > { %v2861_v23 = vpop.permute.xlu1 %1699 }
 0x404   : > { %v2863_v35 = vpop.permute.xlu1 %1709 }
 0x408   : > { %v2865_v60 = vpop.permute.xlu1 %1719 }
 0x40c   : > { %v2867_v11 = vpop.permute.xlu1 %1729 }
 0x411   : > { %v791_v27 = vpop.permute.xlu1 %790 }
 0x412   : > { %v793_v34 = vsub.f32 %v791_v27, %v2705_v49 }
 0x414   : > { %v794_v37 = vmul.f32 1.442695, %v793_v34 }
 0x416   : > { %2237 = vpow2.f32 %v794_v37 }
 0x420   : > { %v2238_v21 = vpop.eup %2237 }
 0x421   : > { %v841_v63 = vmul.f32 %v2238_v21, %v2619_v51 }
 0x423   : > { %v849_v39 = vrot.slane %v841_v63, %v2719_v25  ;;  %v1584_v63 = vsub.f32 0.0, %v2653_v1 }
 0x425   : > { %v850_v40 = vcombine.high %v849_v39, %v849_v39  ;;  %v857_v42 = vrot.slane %v849_v39, %v2719_v25  ;;  %v1585_v39 = vsub.f32 0.0, %v2657_v3 }
 0x427   : > { %v870_v43 = vrot.slane %v857_v42, %v2708_v50  ;;  %v864_v41 = vrot.slane %v850_v40, %v2719_v25  ;;  %v865_v29 = vcombine.high %v857_v42, %v857_v42  ;;  %v1586_v40 = vsub.f32 0.0, %v2651_v0 }
 0x428   : > { %v1592_v42 = vmul.f32 1.442695, %v1584_v63 }
 0x429   : > { %v1476_v30 = vmul.f32 %v870_v43, %v2669_v13  ;;  %v1477_v31 = vmul.f32 %v870_v43, %v2675_v16  ;;  %v874_v49 = vrot.slane %v864_v41, %v2708_v50  ;;  %v878_v17 = vrot.slane %v865_v29, %v2708_v50 }
 0x42a   : > { %v866_v33 = vcombine.high %v864_v41, %v864_v41  ;;  %v1594_v43 = vmul.f32 1.442695, %v1585_v39  ;;  %v1587_v41 = vsub.f32 0.0, %v2655_v2  ;;  %v1596_v29 = vmul.f32 1.442695, %v1586_v40 }
 0x42b   : > { %v1484_v51 = vpack.c.bf16 %v1477_v31, %v1476_v30  ;;  %v1478_v44 = vmul.f32 %v2667_v12, %v874_v49  ;;  %v1479_v15 = vmul.f32 %v2671_v14, %v874_v49  ;;  %v1480_v48 = vmul.f32 %v878_v17, %v2681_v19  ;;  %v2217_v14 = vld [vmem:[%s3006_s8] sm:$0xff]   ;;  %v2218_v19 = vld [vmem:[%s3006_s8 + $0x8] sm:$0xff]  }
 0x42c   : > { %v1481_v27 = vmul.f32 %v878_v17, %v2687_v22  ;;  %v882_v25 = vrot.slane %v866_v33, %v2708_v50  ;;  %2123 = vmatpush3.bf16.msra.mxu0 %v2217_v14  ;;  %v2220_v50 = vld [vmem:[%s3006_s8 + $0x18] sm:$0xff]   ;;  %2239 = vpow2.f32 %v1592_v42  ;;  %v1588_v30 = vsub.f32 0.0, %v2661_v6  ;;  %v1409_v42 = vpop.permute.xlu0 %1408 }
 0x42d   : > { %2114 = vmatprep.mubr.msk.bf16.mxu1 %vm1191_vm9, %v1484_v51  ;;  %v1485_v13 = vpack.c.bf16 %v1479_v15, %v1478_v44  ;;  %2124 = vmatprep.subr.bf16.mxu0 %v2383_v5  ;;  %2241 = vpow2.f32 %v1594_v43  ;;  %v1589_v31 = vsub.f32 0.0, %v2665_v10  ;;  %v1598_v49 = vmul.f32 1.442695, %v1587_v41 }
 0x42e   : > { %v1486_v16 = vpack.c.bf16 %v1481_v27, %v1480_v48  ;;  %v1482_v34 = vmul.f32 %v2679_v18, %v882_v25  ;;  %v1483_v37 = vmul.f32 %v2683_v20, %v882_v25  ;;  %v2219_v18 = vld [vmem:[%s3006_s8 + $0x10] sm:$0xff]   ;;  %2243 = vpow2.f32 %v1596_v29 }
 0x42f   : > { %2115 = vmatmul.mubr.msk.bf16.vlgmr.msra.gmra.mrb[24].mxu1 %vm1191_vm9, %v1485_v13  ;;  %v1600_v17 = vmul.f32 1.442695, %v1588_v30  ;;  %v1602_v33 = vmul.f32 1.442695, %v1589_v31  ;;  %2245 = vpow2.f32 %v1598_v49  ;;  %v1591_v51 = vsub.f32 0.0, %v2663_v8 }
 0x430   : > { %2118 = vmatprep.mubr.msk.bf16.mxu1 %vm1191_vm9, %v1486_v16  ;;  %v1487_v21 = vpack.c.bf16 %v1483_v37, %v1482_v34  ;;  %2125 = vmatpush3.bf16.msra.mxu0 %v2218_v19 }
 0x431   : > { %2126 = vmatprep.subr.bf16.mxu0 %v2383_v5  ;;  %2247 = vpow2.f32 %v1600_v17  ;;  %v1606_v48 = vmul.f32 1.442695, %v1591_v51 }
 0x432   : > { %2249 = vpow2.f32 %v1602_v33 }
 0x434   : > { %2127 = vmatpush3.bf16.msra.mxu0 %v2219_v18 }
 0x435   : > { %2128 = vmatprep.subr.bf16.mxu0 %v2383_v5  ;;  %v1590_v5 = vsub.f32 0.0, %v2659_v4 }
 0x436   : > { %v2240_v15 = vpop.eup %2239 }
 0x437   : > { %2119 = vmatmul.mubr.msk.bf16.gmra.mrb[28].mxu1 %vm1191_vm9, %v1487_v21  ;;  %v1604_v44 = vmul.f32 1.442695, %v1590_v5  ;;  %v2242_v27 = vpop.eup %2241  ;;  %v1608_v13 = vadd.f32 1.0, %v2240_v15 }
 0x438   : > { %2129 = vmatpush3.bf16.msra.mxu0 %v2220_v50  ;;  %v2244_v25 = vpop.eup %2243  ;;  %v1609_v16 = vadd.f32 1.0, %v2242_v27 }
 0x439   : > { %2251 = vpow2.f32 %v1604_v44  ;;  %v2246_v34 = vpop.eup %2245  ;;  %v1610_v37 = vadd.f32 1.0, %v2244_v25  ;;  %v1438_v25 = vmul.f32 %v2667_v12, %v1409_v42 }
 0x43a   : > { %2253 = vpow2.f32 %v1606_v48  ;;  %v1611_v19 = vadd.f32 1.0, %v2246_v34 }
 0x43b   : > { %2255 = vrcp.f32 %v1608_v13  ;;  %v2248_v21 = vpop.eup %2247  ;;  %v1424_v13 = vpop.permute.xlu0 %1423 }
 0x43c   : > { %2257 = vrcp.f32 %v1609_v16  ;;  %v2250_v14 = vpop.eup %2249  ;;  %v1612_v50 = vadd.f32 1.0, %v2248_v21  ;;  %v1441_v42 = vmul.f32 %v1424_v13, %v2687_v22 }
 0x43d   : > { %2259 = vrcp.f32 %v1610_v37  ;;  %v1613_v63 = vadd.f32 1.0, %v2250_v14 }
 0x43e   : > { %2261 = vrcp.f32 %v1611_v19 }
 0x43f   : > { %2263 = vrcp.f32 %v1612_v50 }
 0x440   : > { %2265 = vrcp.f32 %v1613_v63 }
 0x443   : > { %v2252_v18 = vpop.eup %2251 }
 0x444   : > { %v2254_v39 = vpop.eup %2253  ;;  %v1614_v40 = vadd.f32 1.0, %v2252_v18 }
 0x445   : > { %v2256_v43 = vpop.eup %2255  ;;  %v1615_v41 = vadd.f32 1.0, %v2254_v39 }
 0x446   : > { %v2258_v30 = vpop.eup %2257  ;;  %2267 = vrcp.f32 %v1614_v40  ;;  %v1632_v33 = vmul.f32 %v2256_v43, %v2653_v1 }
 0x447   : > { %v2260_v17 = vpop.eup %2259  ;;  %v1633_v48 = vmul.f32 %v2258_v30, %v2657_v3  ;;  %2269 = vrcp.f32 %v1615_v41  ;;  %v1434_v30 = vpop.permute.xlu0 %1433 }
 0x448   : > { %v2262_v1 = vpop.eup %2261 }
 0x449   : > { %v2264_v18 = vpop.eup %2263 }
 0x44a   : > { %v2266_v63 = vpop.eup %2265 }
 0x44b   : > { %v1637_v22 = vmul.f32 %v2266_v63, %v2665_v10 }
 0x4c1   : > { %v1232_v29 = vpop.f32.mrb[16].mxu1 }
 0x4c2   : > { %v1380_v31 = vadd.f32 %v1232_v29, %v2730_v53  ;;  %v2092_v49 = vpop.f32.mrb[17].mxu1  ;;  %v2268_v29 = vpop.eup %2267 }
 0x4c3   : > { %v1235_v5 = vpop.f32.mrb[18].mxu1  ;;  %v2270_v13 = vpop.eup %2269 }
 0x4c4   : > { %v1444_v51 = vadd.f32 %v2820_v28, %v1380_v31  ;;  %v1381_v44 = vadd.f32 %v1235_v5, %v2732_v54  ;;  %v2093_v15 = vpop.f32.mrb[19].mxu1  ;;  %v1634_v28 = vmul.f32 %v2260_v17, %v2651_v0 }
 0x4c5   : > { %v1279_v27 = vpop.f32.mrb[20].mxu0 }
 0x4c6   : > { %v2919_v16 = vmul.f32 %v1632_v33, %v1444_v51  ;;  %v1445_v53 = vadd.f32 %v2831_v32, %v1381_v44  ;;  %v1382_v34 = vadd.f32 %v1279_v27, %v2738_v7  ;;  %v2098_v37 = vpop.f32.mrb[21].mxu0  ;;  %v1635_v32 = vmul.f32 %v2262_v1, %v2655_v2 }
 0x4c7   : > { %v1282_v21 = vpop.f32.mrb[22].mxu0 }
 0x4c8   : > { %v1648_v54 = vmul.f32 %v2919_v16, %v2919_v16  ;;  %v2926_v3 = vmul.f32 %v1633_v48, %v1445_v53  ;;  %v1446_v14 = vadd.f32 %v1438_v25, %v1382_v34  ;;  %v1383_v12 = vadd.f32 %v1282_v21, %v2740_v9  ;;  %v2099_v19 = vpop.f32.mrb[23].mxu0 }
 0x4c9   : > { %v1326_v50 = vpop.f32.mrb[20].mxu1  ;;  %v1638_v53 = vmul.f32 %v2268_v29, %v2659_v4 }
 0x4ca   : > { %v1649_v7 = vmul.f32 %v2926_v3, %v2926_v3  ;;  %v2932_v39 = vmul.f32 %v1634_v28, %v1446_v14  ;;  %v1447_v0 = vadd.f32 %v2842_v45, %v1383_v12  ;;  %v2104_v40 = vpop.f32.mrb[21].mxu1  ;;  %v1656_v43 = vsel %vm1191_vm9, %v1648_v54, 0.0 }
 0x4cb   : > { %v1384_v9 = vadd.f32 %v1326_v50, %v2743_v24  ;;  %v1329_v41 = vpop.f32.mrb[22].mxu1  ;;  %v1636_v45 = vmul.f32 %v2264_v18, %v2661_v6 }
 0x4cc   : > { %v1657_v31 = vsel %vm1191_vm9, %v1649_v7, 0.0  ;;  %v1650_v2 = vmul.f32 %v2932_v39, %v2932_v39  ;;  %v1643_v49 = vmul.f32 %v1635_v32, %v1447_v0  ;;  %v1385_v5 = vadd.f32 %v1329_v41, %v2745_v26  ;;  %v2105_v17 = vpop.f32.mrb[23].mxu1 }
 0x4cd   : > { %v1658_v33 = vadd.f32 %v1657_v31, %v1656_v43  ;;  %v1448_v51 = vadd.f32 %v2850_v59, %v1384_v9  ;;  %v1373_v24 = vpop.f32.mrb[24].mxu0  ;;  %v1443_v26 = vmul.f32 %v2683_v20, %v1434_v30  ;;  %v1705_v30 = vpop.permute.xlu0 %1704 }
 0x4ce   : > { %v1659_v44 = vsel %vm1191_vm9, %v1650_v2, 0.0  ;;  %v1651_v15 = vmul.f32 %v1643_v49, %v1643_v49  ;;  %v1449_v48 = vadd.f32 %v1441_v42, %v1385_v5  ;;  %v1386_v27 = vadd.f32 %v1373_v24, %v2747_v36  ;;  %v2110_v25 = vpop.f32.mrb[25].mxu0 }
 0x4cf   : > { %v1660_v34 = vadd.f32 %v1659_v44, %v1658_v33  ;;  %v1644_v6 = vmul.f32 %v1636_v45, %v1448_v51  ;;  %v1376_v37 = vpop.f32.mrb[26].mxu0  ;;  %v1639_v36 = vmul.f32 %v2270_v13, %v2663_v8 }
 0x4d0   : > { %v1661_v10 = vsel %vm1191_vm9, %v1651_v15, 0.0  ;;  %v1645_v1 = vmul.f32 %v1637_v22, %v1449_v48  ;;  %v1450_v59 = vadd.f32 %v2859_v52, %v1386_v27  ;;  %v1387_v28 = vadd.f32 %v1376_v37, %v2749_v38  ;;  %v2111_v21 = vpop.f32.mrb[27].mxu0  ;;  %v1454_v22 = vpop.permute.xlu1 %1453 }
 0x4d1   : > { %v1662_v54 = vadd.f32 %v1661_v10, %v1660_v34  ;;  %v1652_v14 = vmul.f32 %v1644_v6, %v1644_v6  ;;  %v1715_v17 = vpop.permute.xlu0 %1714 }
 0x4d2   : > { %v1653_v12 = vmul.f32 %v1645_v1, %v1645_v1  ;;  %v1646_v19 = vmul.f32 %v1638_v53, %v1450_v59  ;;  %v1451_v4 = vadd.f32 %v1443_v26, %v1387_v28 }
 0x4d3   : > { %v1663_v20 = vsel %vm1191_vm9, %v1652_v14, 0.0 }
 0x4d4   : > { %v1664_v18 = vadd.f32 %v1663_v20, %v1662_v54  ;;  %v1665_v50 = vsel %vm1191_vm9, %v1653_v12, 0.0  ;;  %v1654_v63 = vmul.f32 %v1646_v19, %v1646_v19  ;;  %v1647_v32 = vmul.f32 %v1639_v36, %v1451_v4  ;;  %v1458_v59 = vpop.permute.xlu1 %1457 }
 0x4d5   : > { %v1725_v45 = vpop.permute.xlu0 %1724 }
 0x4d6   : > { %v1666_v7 = vadd.f32 %v1665_v50, %v1664_v18  ;;  %v1667_v52 = vsel %vm1191_vm9, %v1654_v63, 0.0  ;;  %v1655_v0 = vmul.f32 %v1647_v32, %v1647_v32 }
 0x4d8   : > { %v1668_v38 = vadd.f32 %v1667_v52, %v1666_v7  ;;  %v1669_v40 = vsel %vm1191_vm9, %v1655_v0, 0.0 }
 0x4d9   : > { %v1735_v48 = vpop.permute.xlu0 %1734 }
 0x4da   : > { %v1670_v42 = vadd.f32 %v1669_v40, %v1668_v38 }
 0x4dc   : > { %v1671_v43 = vrot.slane %v1670_v42, 4 }
 0x4de   : > { %v1672_v8 = vadd.f32 %v1671_v43, %v1670_v42  ;;  %v2273_v43 = vld [vmem:[%s2552_s23] sm:$0xff] }
 0x4e0   : > { %v1673_v9 = vrot.slane %v1672_v8, 2 }
 0x4e2   : > { %v1674_v41 = vadd.f32 %v1673_v9, %v1672_v8 }
 0x4e4   : > { %v1675_v29 = vrot.slane %v1674_v41, 1 }
 0x4e6   : > { %v1676_v31 = vadd.f32 %v1675_v29, %v1674_v41 }
 0x4e8   : > { %v1678_v2 = vmul.f32 0.015625, %v1676_v31 }
 0x4ea   : > { %v1679_v5 = vadd.f32 1e-05, %v1678_v2 }
 0x4ec   : > { %2271 = vrsqrt.f32 %v1679_v5 }
 0x4f6   : > { %v2272_v33 = vpop.eup %2271 }
 0x4f7   : > { %v1687_v51 = vmul.f32 %v2272_v33, %v1646_v19  ;;  %v1688_v24 = vmul.f32 %v2272_v33, %v1647_v32  ;;  %v1681_v44 = vmul.f32 %v2272_v33, %v2919_v16  ;;  %v1682_v15 = vmul.f32 %v2272_v33, %v2926_v3 }
 0x4f8   : > { %v1683_v27 = vmul.f32 %v2272_v33, %v2932_v39  ;;  %v1684_v25 = vmul.f32 %v2272_v33, %v1643_v49  ;;  %v1685_v13 = vmul.f32 %v2272_v33, %v1644_v6  ;;  %v1686_v53 = vmul.f32 %v2272_v33, %v1645_v1  ;;  %v1462_v49 = vpop.permute.xlu1 %1461 }
 0x4f9   : > { %v1743_v26 = vmul.f32 %v2867_v11, %v1687_v51  ;;  %v1744_v34 = vmul.f32 %v1735_v48, %v1688_v24  ;;  %v1737_v37 = vmul.f32 %v2861_v23, %v1681_v44  ;;  %v1738_v10 = vmul.f32 %v1705_v30, %v1682_v15 }
 0x4fa   : > { %v1739_v28 = vmul.f32 %v2863_v35, %v1683_v27  ;;  %v1740_v21 = vmul.f32 %v1715_v17, %v1684_v25  ;;  %v1741_v16 = vmul.f32 %v2865_v60, %v1685_v13  ;;  %v1742_v54 = vmul.f32 %v1725_v45, %v1686_v53 }
 0x4fb   : > { %v1748_v3 = vpack.c.bf16 %v1744_v34, %v1743_v26  ;;  %v1745_v14 = vpack.c.bf16 %v1738_v10, %v1737_v37  ;;  %v1470_v6 = vmul.f32 %v1458_v59, %v2625_v55  ;;  %v1468_v11 = vmul.f32 %v1454_v22, %v2612_v46 }
 0x4fc   : > { %v1746_v36 = vpack.c.bf16 %v1740_v21, %v1739_v28  ;;  %v1747_v39 = vpack.c.bf16 %v1742_v54, %v1741_v16  ;;  %v1471_v1 = vmul.f32 %v1458_v59, %v2627_v56  ;;  %v1469_v19 = vmul.f32 %v1454_v22, %v2614_v47  ;;  %v1466_v50 = vpop.permute.xlu1 %1465 }
 0x4fd   : > { %1757 = vxpose.xlu0.c.b16.start [1/4] (short) (narrow) %v1745_v14, 16  ;;  %v1474_v46 = vmul.f32 %v1466_v50, %v2642_v61  ;;  %v1472_v47 = vmul.f32 %v1462_v49, %v2631_v57  ;;  %v1475_v63 = vmul.f32 %v1466_v50, %v2644_v62  ;;  %v1473_v52 = vmul.f32 %v1462_v49, %v2633_v58 }
 0x501   : > { %1758 = vxpose.xlu0.c.b16.cont [2/4] (short) (narrow) %v1746_v36, 16 }
 0x502   : > { %v2116_v23 = vpop.f32.mrb[24].mxu1 }
 0x503   : > { %v1570_v12 = vadd.f32 %v2116_v23, %v1470_v6  ;;  %v1537_v35 = vpop.f32.mrb[25].mxu1 }
 0x504   : > { %v1568_v60 = vadd.f32 %v1537_v35, %v1468_v11  ;;  %v2117_v4 = vpop.f32.mrb[26].mxu1 }
 0x505   : > { %1578 = vst.msk [vmem:[#allocation2 + $0x10] sm:$0xff] %vm903_vm3, %v1570_v12  ;;  %v1571_v20 = vadd.f32 %v2117_v4, %v1471_v1  ;;  %1759 = vxpose.xlu0.c.b16.cont [3/4] (short) (narrow) %v1747_v39, 16  ;;  %v1540_v18 = vpop.f32.mrb[27].mxu1 }
 0x506   : > { %1576 = vst.msk [vmem:[#allocation2] sm:$0xff] %vm903_vm3, %v1568_v60  ;;  %v1569_v55 = vadd.f32 %v1540_v18, %v1469_v19 }
 0x507   : > { %1579 = vst.msk [vmem:[#allocation2 + $0x18] sm:$0xff] %vm903_vm3, %v1571_v20 }
 0x508   : > { %1577 = vst.msk [vmem:[#allocation2 + $0x8] sm:$0xff] %vm903_vm3, %v1569_v55 }
 0x509   : > { %1760 = vxpose.xlu0.c.b16.end [4/4] (short) (narrow) %v1748_v3, 16 }
 0x50a   : > { %v2120_v56 = vpop.f32.mrb[28].mxu1 }
 0x50b   : > { %v1574_v32 = vadd.f32 %v2120_v56, %v1474_v46  ;;  %v1553_v7 = vpop.f32.mrb[29].mxu1 }
 0x50c   : > { %v1572_v0 = vadd.f32 %v1553_v7, %v1472_v47  ;;  %v2121_v38 = vpop.f32.mrb[30].mxu1 }
 0x50d   : > { %1582 = vst.msk [vmem:[#allocation2 + $0x30] sm:$0xff] %vm903_vm3, %v1574_v32  ;;  %v1575_v40 = vadd.f32 %v2121_v38, %v1475_v63  ;;  %v1556_v42 = vpop.f32.mrb[31].mxu1 }
 0x50e   : > { %1580 = vst.msk [vmem:[#allocation2 + $0x20] sm:$0xff] %vm903_vm3, %v1572_v0  ;;  %v1573_v61 = vadd.f32 %v1556_v42, %v1473_v52 }
 0x50f   : > { %1583 = vst.msk [vmem:[#allocation2 + $0x38] sm:$0xff] %vm903_vm3, %v1575_v40 }
 0x510   : > { %1581 = vst.msk [vmem:[#allocation2 + $0x28] sm:$0xff] %vm903_vm3, %v1573_v61 }
 0x563   : > { %v1765_v57 = vpop.trf.xlu0 }
 0x564   : > { %2131 = vmatmul.mubr.msk.bf16.vlgmr.msra.gmra.mrb[28].mxu0 %vm1797_vm11, %v1765_v57 }
 0x637   : > { %v1835_v62 = vpop.f32.mrb[28].mxu0 }
 0x638   : > { %v1841_v58 = vadd.f32 %v2273_v43, %v1835_v62  ;;  %v2132_v8 = vpop.f32.mrb[29].mxu0 }
 0x639   : > { %v1838_v9 = vpop.f32.mrb[30].mxu0 }
 0x63a   : > { %1842 = vst.msk [vmem:[%s2557_s18] sm:$0xff] %vm408_vm1, %v1841_v58  ;;  %v2133_v41 = vpop.f32.mrb[31].mxu0 }
 0x63b PF: > { %s21_s13 = sadd.s32 1, %s2376_s13   ;;  %s3020_s10 = sld [smem:[#allocation9_spill]] }
 0x63c   : > { %p18_p10 = scmp.ge.s32.totalorder %s21_s13, 6   ;;  %s3021_s16 = sld [smem:[#allocation10_spill]] }
 0x63d   : > { %s3022_s12 = sld [smem:[#allocation11_spill]]  ;;  %s3023_s30 = smov %s2368_s11 }
 0x63e   :  { %20 = sbr.rel (!%p18_p10) target bundleno = 4 (0x4), region = 99 }
 0x642   : > { %s3024_s11 = smov %s3021_s16 }
 0x645   :  { %1870 = vsyncpa [#allocation4], 1 }
 0x646   :  { %1872 = vsyncpa [#allocation4 + $0x1], 1 }
 0x647   :  { %1873 = vsyncpa [#allocation6], 1 }

// kernel: base_mamba_forward.3
= control target key start
LH: loop header
LB: loop body
LE: loop exit
PB: predicated region body
PF: predicated region fallthrough
CT: control target
= control target key end

     0   :  { %s2968_s0 = inlined_call_operand.vmem [shape: f32[2,16,32], index: 0, kind: input, shape index: {}]   ;;  %s2969_s1 = inlined_call_operand.vmem [shape: f32[1,32], index: 1, kind: input, shape index: {}]   ;;  %s2970_s2 = inlined_call_operand.vmem [shape: bf16[32,128], index: 2, kind: input, shape index: {}]   ;;  %s2971_s3 = inlined_call_operand.vmem [shape: bf16[32,32], index: 3, kind: input, shape index: {}]   ;;  %s2972_s4 = inlined_call_operand.vmem [shape: f32[32,4], index: 4, kind: input, shape index: {}]   ;;  %s2973_s5 = inlined_call_operand.vmem [shape: f32[4,1], index: 5, kind: input, shape index: {}]   ;;  %s2974_s6 = inlined_call_operand.vmem [shape: f32[64,1], index: 6, kind: input, shape index: {}, may-alias: {6,7}]   ;;  %s2975_s7 = inlined_call_operand.vmem [shape: f32[64,1], index: 7, kind: input, shape index: {}, may-alias: {6,7}]   ;;  %s2976_s8 = inlined_call_operand.vmem [shape: bf16[64,32], index: 8, kind: input, shape index: {}]   ;;  %s2977_s9 = inlined_call_operand.hbm [shape: f32[2,16,32], index: 9, kind: output, shape index: {}]  }
   0x1   :  { %2982 = sst [smem:[#allocation9_spill]] %s2968_s0 }
   0x2   :  { %14 = vsyncpa [#allocation4], 0 }
   0x3   :  { %16 = vsyncpa [#allocation4 + $0x1], 0  ;;  %s2386_s30 = smov 0   ;;  %s2388_s10 = smov 0  }
   0x4   :  { %s2390_s11 = smov 0   ;;  %s2392_s12 = smov 0  }
   0x5   :  { %s2394_s13 = smov 0   ;;  %s2396_s14 = smov 0  }
   0x6   :  { %s2398_s15 = smov 0   ;;  %s2400_s16 = smov 0  }
   0x7 LB: > { %2983 = sst [smem:[#allocation6_spill]] %s2319_s15  ;;  %s1901_s17 = sadd.s32 4294967295, %s2323_s16   ;;  %s2323_s16 = sphi %s2400_s16, %s22_s16   ;;  %s2319_s15 = sphi %s2398_s15, %s2994_s15   ;;  %s2315_s14 = sphi %s2396_s14, %s2999_s14   ;;  %s2311_s13 = sphi %s2394_s13, %s2992_s13   ;;  %s2307_s12 = sphi %s2392_s12, %s2998_s12   ;;  %s2303_s11 = sphi %s2390_s11, %s2997_s11   ;;  %s2299_s10 = sphi %s2388_s10, %s2996_s10   ;;  %s2295_s30 = sphi %s2386_s30, %s2995_s30  }
   0x8   : > { %s1902_s18 = sadd.s32 4294967294, %s2323_s16   ;;  %s31_s19 = sadd.s32 1, %s2315_s14 }
   0x9   : > { %p32_p0 = scmp.ge.s32.totalorder %s31_s19, 2  ;;  %s34_s20 = sadd.s32 1, %s2319_s15 }
   0xa   : > { %p249_p1 = scmp.ne.s32.totalorder %s2303_s11, %s2299_s10  ;;  %p250_p2 = scmp.eq.s32.totalorder %s1901_s17, 3 }
   0xb   : > { %s3001_s19 = smov (%p32_p0, %s31_s19), 0  ;;  %s3003_s20 = smov (!%p32_p0, %s34_s20), %s2319_s15 }
   0xc   : > { %2984 = sst [smem:[#allocation7_spill]] %s3001_s19  ;;  %s235_s21 = ssub.s32 %s2315_s14, %s3001_s19 }
   0xd   : > { %p2437_p3 = por %p250_p2, %p249_p1  ;;  %p36_p4 = scmp.ge.s32.totalorder %s3003_s20, 2 }
   0xe   : > { %p255_p5 = scmp.ne.s32.totalorder %s2299_s10, %s2295_s30  ;;  %p256_p6 = scmp.eq.s32.totalorder %s1902_s18, 3 }
   0xf   : > { %p1905_p7 = scmp.ge.s32.totalorder %s2323_s16, 1  ;;  %s3005_s20 = smov (%p36_p4, %s3003_s20), 0 }
  0x10   : > { %2986 = sst [smem:[#allocation8_spill]] %s3005_s20  ;;  %p2446_p8 = por %p256_p6, %p255_p5 }
  0x11   : > { %p309_p9 = scmp.lt.s32.totalorder %s2323_s16, 5  ;;  %s234_s24 = ssub.s32 %s2319_s15, %s3005_s20 }
  0x12   : > { %s239_s25 = sadd.s32 1, %s2303_s11  ;;  %s236_s26 = sor.u32 %s235_s21, %s234_s24 }
  0x13   : > { %p310_p10 = pnand %p1905_p7, %p309_p9  ;;  %p237_p11 = scmp.eq.s32.totalorder %s236_s26, 0 }
  0x14   : > { %s2981_s28 = sand.u32 (!%p310_p10), 1, %s2299_s10   ;;  %p348_p12 = scmp.lt.s32.totalorder (!%p310_p10), %s2311_s13, 1 }
  0x15   : > { %s2455_s27 = scalar_select %p237_p11, %s2303_s11, %s239_s25  }
  0x16   : > { %313 = sbr.rel (%p310_p10) target bundleno = 1564 (0x61c), region = 56  ;;  %s2461_s29 = sshll.u32 (!%p310_p10), %s2981_s28, 3 }
  0x17   : > { %p350_p13 = scmp.lt.s32.totalorder (!%p310_p10), %s2307_s12, 1  ;;  %s2988_s0 = sld [smem:[#allocation9_spill]] (!%p310_p10) }
  0x18   : > { %p1909_p0 = scmp.ne.s32.totalorder (!%p310_p10), %s2307_s12, 0 }
  0x1d   : > { %s349_s17 = scalar_select %p348_p12, %s2311_s13, 1 }
  0x1e   : > { %s351_s18 = scalar_select %p350_p13, %s2307_s12, 1 }
  0x1f   : > { %s1907_s21 = sshll.u32 %s349_s17, 1  ;;  %360 = sbr.rel (%p1909_p0) target bundleno = 38 (0x26), region = 60  ;;  %vm361_vm0 = vcmask (!%p1909_p0), 130048   ;;  %v2325_v0 = vmov (!%p1909_p0), 0.0  }
  0x20   : > { %s353_s24 = sadd.s32 %s1907_s21, %s351_s18  ;;  %362 = vst.msk [vmem:[#allocation2] sm:$0xff] (!%p1909_p0), %vm361_vm0, %v2325_v0  ;;  %363 = vst.msk [vmem:[#allocation2 + $0x8] sm:$0xff] (!%p1909_p0), %vm361_vm0, %v2325_v0 }
  0x21   : > { %s1908_s25 = sshll.u32 %s353_s24, 3  ;;  %364 = vst.msk [vmem:[#allocation2 + $0x10] sm:$0xff] (!%p1909_p0), %vm361_vm0, %v2325_v0  ;;  %365 = vst.msk [vmem:[#allocation2 + $0x18] sm:$0xff] (!%p1909_p0), %vm361_vm0, %v2325_v0 }
  0x22   : > { %s2469_s19 = scalar_lea.vmem %s2988_s0, %s1908_s25  ;;  %366 = vst.msk [vmem:[#allocation2 + $0x20] sm:$0xff] (!%p1909_p0), %vm361_vm0, %v2325_v0  ;;  %367 = vst.msk [vmem:[#allocation2 + $0x28] sm:$0xff] (!%p1909_p0), %vm361_vm0, %v2325_v0 }
  0x23   : > { %368 = vst.msk [vmem:[#allocation2 + $0x30] sm:$0xff] (!%p1909_p0), %vm361_vm0, %v2325_v0  ;;  %369 = vst.msk [vmem:[#allocation2 + $0x38] sm:$0xff] (!%p1909_p0), %vm361_vm0, %v2325_v0 }
  0x26 PF: > { %v370_v1 = vld [vmem:[%s2469_s19] sm:$0xff]  ;;  %vm372_vm1 = vcmask 261120   ;;  %v2326_v5 = vmov 0.0   ;;  %vm2327_vm2 = vmmov 0   ;;  %v2169_v6 = vld [vmem:[%s2971_s3 + $0x8] sm:$0xff]   ;;  %v2328_v10 = vmov 0  }
  0x27   : > { %v371_v2 = vmul.f32 %v370_v1, %v370_v1  ;;  %v2168_v4 = vld [vmem:[%s2971_s3] sm:$0xff]   ;;  %2006 = vmatprep.subr.bf16.mxu1 %v2326_v5  ;;  %2010 = vmatprep.mubr.msk.bf16.mxu1 %vm2327_vm2, %v2326_v5  ;;  %v603_v8 = vld [vmem:[%s2972_s4 + $0x8] sm:$0xff]  ;;  %v604_v11 = vld [vmem:[%s2972_s4 + $0x10] sm:$0xff]  ;;  %vm867_vm3 = vcmask 130048   ;;  %s2329_s24 = smov 112   ;;  %s2330_s25 = smov 1  }
  0x28   : > { %2007 = vmatpush3.bf16.msra.mxu1 %v2168_v4  ;;  %v602_v7 = vld [vmem:[%s2972_s4] sm:$0xff]  ;;  %2165 = vset.pattern.permute.xlu1 %v2328_v10  ;;  %v605_v12 = vld [vmem:[%s2972_s4 + $0x18] sm:$0xff]  ;;  %v2171_v14 = vld [vmem:[%s2970_s2 + $0x8] sm:$0xff]   ;;  %vm733_vm5 = vcmask 7168   ;;  %s2331_s26 = smov 2   ;;  %vm740_vm6 = vcmask 15360  }
  0x29   : > { %v373_v3 = vsel %vm372_vm1, %v371_v2, 0.0  ;;  %2008 = vmatprep.subr.bf16.mxu1 %v2326_v5  ;;  %v722_v9 = vld [vmem:[%s2973_s5] sm:$0xf]  ;;  %v2536_v47 = vld [vmem:[#allocation2 + $0x8] sm:$0xff]  ;;  %v2547_v55 = vld [vmem:[#allocation2 + $0x10] sm:$0xff]  ;;  %vm747_vm7 = vcmask 31744  }
  0x2a   : > { %374 = vadd.xlane.f32.xlu0 %v373_v3  ;;  %725 = vperm.xlu1 %2165, %v722_v9   ;;  %v2170_v13 = vld [vmem:[%s2970_s2] sm:$0xff]   ;;  %v2549_v56 = vld [vmem:[#allocation2 + $0x18] sm:$0xff]  ;;  %v2555_v58 = vld [vmem:[#allocation2 + $0x28] sm:$0xff]  ;;  %vm1155_vm9 = vcmask 64512   ;;  %vm1464_vm10 = vcmask 1043456   ;;  %vm1761_vm11 = vcmask 523264  }
  0x2b   : > { %v1910_v19 = vld [vmem:[%s2969_s1] ss:$0 sm:$0xff]  ;;  %v860_v59 = vpack.c.bf16 %v2549_v56, %v2547_v55  ;;  %v2564_v61 = vld [vmem:[#allocation2 + $0x30] sm:$0xff]  ;;  %v2566_v62 = vld [vmem:[#allocation2 + $0x38] sm:$0xff]  ;;  %s1945_s18 = sshll.u32 %s2311_s13, 1  ;;  %s2991_s13 = sand.u32 1, %s2299_s10  }
  0x2c   : > { %2009 = vmatpush3.bf16.msra.mxu1 %v2169_v6  ;;  %v2534_v46 = vld [vmem:[#allocation2] sm:$0xff]  ;;  %v862_v63 = vpack.c.bf16 %v2566_v62, %v2564_v61  ;;  %s1819_s21 = sadd.s32 %s2307_s12, %s1945_s18  ;;  %s1808_s28 = scalar_lea.sflag [#allocation4], %s2991_s13 }
  0x2d   : > { %2014 = vmatprep.subr.mxu1 %v2326_v5  ;;  %v859_v48 = vpack.c.bf16 %v2536_v47, %v2534_v46  ;;  %v2553_v57 = vld [vmem:[#allocation2 + $0x20] sm:$0xff]  ;;  %s2335_s17 = smov [#allocation3]  }
  0x2e   : > { %v861_v60 = vpack.c.bf16 %v2555_v58, %v2553_v57  ;;  %s2233_s18 = sshll.u32 %s2335_s17, 4  ;;  %s2234_s18 = int_to_ptr.vmem [resolvable:$false] %s2233_s18 }
  0x4d   : > { %406 = vxpose.xlu1.c.b16.start [1/2] (short) %v2170_v13, 128 }
  0x51   : > { %407 = vxpose.xlu1.c.b16.end [2/2] (short) %v2171_v14, 128 }
  0x57   : > { %606 = vxpose.xlu0.b32.start [1/4] (short) (narrow) %v602_v7, 8 }
  0x5b   : > { %607 = vxpose.xlu0.b32.cont [2/4] (short) (narrow) %v603_v8, 8 }
  0x5f   : > { %608 = vxpose.xlu0.b32.cont [3/4] (short) (narrow) %v604_v11, 8 }
  0x63   : > { %609 = vxpose.xlu0.b32.end [4/4] (short) (narrow) %v605_v12, 8 }
  0x8c   : > { %2166 = vset.pattern.permute.xlu0 %v2328_v10 }
  0xa9   : > { %v726_v25 = vpop.permute.xlu1 %725 }
  0xb3   : > { %v414_v26 = vpop.trf.xlu1 }
  0xb4   : > { %1990 = vmatprep.mubr.msk.bf16.mxu0 %vm372_vm1, %v414_v26  ;;  %v1359_v26 = vld [vmem:[%s2974_s6 + $0x38] sm:$0xff] }
  0xb7   : > { %v375_v15 = vpop.xlane.xlu0 %374  ;;  %v415_v27 = vpop.trf.xlu1 }
  0xb8   : > { %v377_v16 = vmul.f32 0.03125, %v375_v15 }
  0xba   : > { %v378_v17 = vadd.f32 1e-05, %v377_v16 }
  0xbb   : > { %v416_v28 = vpop.trf.xlu1 }
  0xbc   : > { %2176 = vrsqrt.f32 %v378_v17 }
  0xbf   : > { %v417_v29 = vpop.trf.xlu1 }
  0xc3   : > { %v418_v30 = vpop.trf.xlu1 }
  0xc6   : > { %v2177_v18 = vpop.eup %2176 }
  0xc7   : > { %v380_v20 = vmul.f32 %v2177_v18, %v370_v1  ;;  %v419_v31 = vpop.trf.xlu1 }
  0xc9   : > { %v388_v21 = vmul.f32 %v1910_v19, %v380_v20 }
  0xcb   : > { %v389_v22 = vpack.c.bf16 %v388_v21, %v388_v21  ;;  %v420_v32 = vpop.trf.xlu1 }
  0xcd   : > { %2081 = vmatprep.subr.msk.bf16.mxu0 %vm372_vm1, %v389_v22  ;;  %2011 = vmatmul.mubr.msk.bf16.vlgmr.msra.gmra.mrb[0].mxu1 %vm372_vm1, %v389_v22  ;;  %v447_v23 = vsel %vm372_vm1, %v389_v22, 0 }
  0xce   : > { %2015 = vmatpush3.xpose.msk.msra.mxu1 %vm372_vm1, %v388_v21  ;;  %1989 = vmatpush3.bf16.xpose.msra.mxu0 %v447_v23 }
  0xcf   : > { %2016 = vmatprep.mubr.msk.f32.mxu1 %vm2327_vm2, %v2326_v5  ;;  %2029 = vmatprep.subr.bf16.mxu0 %v2326_v5  ;;  %v421_v33 = vpop.trf.xlu1 }
  0xd5   : > { %1991 = vmatmul.mubr.msk.bf16.vlgmr.msra.gmra.mrb[0].mxu0 %vm372_vm1, %v415_v27 }
  0xd6   : > { %1994 = vmatprep.mubr.msk.bf16.mxu0 %vm372_vm1, %v416_v28 }
  0xd7   : > { %v622_v24 = vpop.trf.xlu0 }
  0xd8   : > { %2017 = vmatmul.mubr.msk.f32.vlgmr.msra.gmra.mrb[4].mxu1 %vm372_vm1, %v622_v24  ;;  %v1354_v24 = vld [vmem:[%s2974_s6 + $0x10] sm:$0xff] }
  0xd9   : > { %2021 = vmatprep.mubr.msk.bf16.mxu1 %vm867_vm3, %v859_v48 }
  0xdd   : > { %1995 = vmatmul.mubr.msk.bf16.gmra.mrb[4].mxu0 %vm372_vm1, %v417_v29 }
  0xde   : > { %1998 = vmatprep.mubr.msk.bf16.mxu0 %vm372_vm1, %v418_v30 }
  0xe5   : > { %1999 = vmatmul.mubr.msk.bf16.gmra.mrb[8].mxu0 %vm372_vm1, %v419_v31 }
  0xe6   : > { %2002 = vmatprep.mubr.msk.bf16.mxu0 %vm372_vm1, %v420_v32 }
  0xed   : > { %2003 = vmatmul.mubr.msk.bf16.gmra.mrb[12].mxu0 %vm372_vm1, %v421_v33 }
  0xee   : > { %2031 = vmatprep.mubr.msk.bf16.mxu0 %vm2327_vm2, %v2326_v5 }
 0x1a0   : > { %v596_v34 = vpop.f32.mrb[0].mxu1 }
 0x1a1   : > { %v2528_v35 = vpack.c.bf16 %v596_v34, %v596_v34  ;;  %v2012_v36 = vpop.f32.mrb[1].mxu1 }
 0x1a2   : > { %v599_v37 = vpop.f32.mrb[2].mxu1 }
 0x1a3   : > { %865 = vrot.lane.b32.xlu1 %v2528_v35, %s2329_s24  ;;  %v2013_v38 = vpop.f32.mrb[3].mxu1  ;;  %v957_v39 = vsel %vm867_vm3, %v2528_v35, 0  ;;  %s1946_s24 = sshll.u32 %s1819_s21, 7  ;;  %s2235_s21 = scalar_lea.vmem %s2234_s18, 256 }
 0x1a4   : > { %2030 = vmatpush3.bf16.xpose.msra.mxu0 %v957_v39  ;;  %s2910_s20 = scalar_lea.hbm %s2977_s9, %s1946_s24 }
 0x1a5   : > { %2041 = vmatprep.subr.bf16.mxu0 %v2326_v5 }
 0x1a8   : > { %v2573_v0 = vpop.f32.mrb[0].mxu0 }
 0x1a9   : > { %v2575_v1 = vpop.f32.mrb[1].mxu0 }
 0x1aa   : > { %v2577_v2 = vpop.f32.mrb[2].mxu0 }
 0x1ab   : > { %v710_v40 = vpop.f32.mrb[4].mxu1  ;;  %v2579_v3 = vpop.f32.mrb[3].mxu0 }
 0x1ac   : > { %v714_v41 = vmin.f32 %v710_v40, 20.0  ;;  %v2018_v42 = vpop.f32.mrb[5].mxu1  ;;  %vm715_vm4 = vcmp.gt.f32.partialorder %v710_v40, 20.0 }
 0x1ae   : > { %v716_v43 = vmul.f32 1.442695, %v714_v41 }
 0x1b0   : > { %2178 = vpow2.f32 %v716_v43  ;;  %v2581_v4 = vpop.f32.mrb[4].mxu0  ;;  %v764_v43 = vlaneseq }
 0x1b1   : > { %v2583_v6 = vpop.f32.mrb[5].mxu0 }
 0x1b2   : > { %v2585_v8 = vpop.f32.mrb[6].mxu0 }
 0x1b3   : > { %v2587_v10 = vpop.f32.mrb[7].mxu0 }
 0x1b8   : > { %v2589_v12 = vpop.f32.mrb[8].mxu0 }
 0x1b9   : > { %v2591_v13 = vpop.f32.mrb[9].mxu0 }
 0x1ba   : > { %v2179_v44 = vpop.eup %2178  ;;  %v2593_v14 = vpop.f32.mrb[10].mxu0 }
 0x1bb   : > { %v718_v45 = vadd.f32 1.0, %v2179_v44  ;;  %v1152_v15 = vpack.c.bf16 %v2593_v14, %v2589_v12  ;;  %v2597_v16 = vpop.f32.mrb[11].mxu0  ;;  %v2625_v44 = vshrl.u32 %v764_v43, 7 }
 0x1bc   : > { %v1151_v17 = vpack.c.bf16 %v2597_v16, %v2591_v13 }
 0x1bd   : > { %2180 = vlog2.f32 %v718_v45 }
 0x1c0   : > { %v2601_v18 = vpop.f32.mrb[12].mxu0 }
 0x1c1   : > { %v2603_v19 = vpop.f32.mrb[13].mxu0 }
 0x1c2   : > { %v2605_v20 = vpop.f32.mrb[14].mxu0 }
 0x1c3   : > { %v1154_v21 = vpack.c.bf16 %v2605_v20, %v2601_v18  ;;  %v2609_v22 = vpop.f32.mrb[15].mxu0 }
 0x1c4   : > { %v1153_v23 = vpack.c.bf16 %v2609_v22, %v2603_v19 }
 0x1c7   : > { %v2181_v49 = vpop.eup %2180 }
 0x1c8   : > { %v720_v50 = vmul.f32 0.6931472, %v2181_v49 }
 0x1ca   : > { %v2541_v51 = vsel %vm715_vm4, %v710_v40, %v720_v50  ;;  %v2630_v50 = vsub.s32 0, %v2625_v44 }
 0x1cb   : > { %v728_v52 = vmul.f32 %v726_v25, %v2541_v51  ;;  %v1357_v25 = vld [vmem:[%s2974_s6 + $0x28] sm:$0xff] }
 0x1cd   : > { %730 = vrot.lane.b32.xlu0 %v728_v52, %s2330_s25  ;;  %s2332_s25 = smov 4  }
 0x1d1   : > { %1372 = vperm.xlu0 %2166, %v1354_v24   ;;  %v1027_v24 = vsub.s32 3, %v2625_v44 }
 0x1d5   : > { %1387 = vperm.xlu0 %2166, %v1357_v25  }
 0x1d9   : > { %1397 = vperm.xlu0 %2166, %v1359_v26  }
 0x215   : > { %v866_v53 = vpop.permute.xlu1 %865 }
 0x216   : > { %2082 = vmatprep.subr.msk.bf16.mxu1 %vm867_vm3, %v866_v53  ;;  %2032 = vmatmul.mubr.msk.bf16.vlgmr.msra.gmra.mrb[16].mxu0 %vm867_vm3, %v866_v53  ;;  %v881_v54 = vsel %vm867_vm3, %v866_v53, 0  ;;  %v1013_v53 = vsub.s32 1, %v2625_v44 }
 0x217   : > { %2020 = vmatpush3.bf16.xpose.msra.mxu1 %v881_v54  ;;  %2043 = vmatprep.mubr.msk.bf16.mxu0 %vm2327_vm2, %v2326_v5 }
 0x218   : > { %2035 = vmatprep.subr.bf16.mxu1 %v2326_v5 }
 0x21e   : > { %2022 = vmatmul.mubr.msk.bf16.vlgmr.msra.gmra.mrb[8].mxu1 %vm867_vm3, %v860_v59  ;;  %v2333_v59 = vmov 1966171168  }
 0x21f   : > { %2025 = vmatprep.mubr.msk.bf16.mxu1 %vm867_vm3, %v861_v60  ;;  %v762_v60 = vunpack.c.l.s4 %v2333_v59 }
 0x226   : > { %2026 = vmatmul.mubr.msk.bf16.gmra.mrb[12].mxu1 %vm867_vm3, %v862_v63 }
 0x227   : > { %2037 = vmatprep.mubr.msk.bf16.mxu1 %vm2327_vm2, %v2326_v5 }
 0x23f   : > { %v731_v7 = vpop.permute.xlu0 %730 }
 0x240   : > { %v734_v9 = vsel %vm733_vm5, 0.0, %v731_v7  ;;  %v1020_v7 = vsub.s32 2, %v2625_v44 }
 0x241   : > { %v735_v11 = vadd.f32 %v734_v9, %v728_v52  ;;  %v763_v9 = vunpack.c.0.s8 %v762_v60  ;;  %v1353_v60 = vld [vmem:[%s2974_s6 + $0x8] sm:$0xff] }
 0x243   : > { %737 = vrot.lane.b32.xlu1 %v735_v11, %s2331_s26  ;;  %v2641_v25 = vsub.s32 %v763_v9, %v2625_v44 }
 0x2b5   : > { %v738_v27 = vpop.permute.xlu1 %737 }
 0x2b6   : > { %v741_v28 = vsel %vm740_vm6, 0.0, %v738_v27 }
 0x2b7   : > { %v742_v29 = vadd.f32 %v741_v28, %v735_v11 }
 0x2b9   : > { %744 = vrot.lane.b32.xlu1 %v742_v29, %s2332_s25  ;;  %s2989_s25 = scalar_lea.vmem [#allocation3], %s2461_s29 }
 0x2ba   : > { %s1823_s0 = sshll.u32 %s2989_s25, 4  ;;  %s2990_s12 = smov %s2989_s25  ;;  %s2912_s0 = int_to_ptr.vmem [resolvable:$true] %s1823_s0 }
 0x2bb   : > { %p2236_p5 = scmp.lt.s32.totalorder %s2912_s0, %s2234_s18 }
 0x2e9   : > { %v2622_v30 = vpop.f32.mrb[16].mxu0 }
 0x2ea   : > { %v2033_v31 = vpop.f32.mrb[17].mxu0 }
 0x2eb   : > { %v996_v32 = vpop.f32.mrb[18].mxu0 }
 0x2ec   : > { %v2034_v33 = vpop.f32.mrb[19].mxu0  ;;  %v1352_v32 = vld [vmem:[%s2974_s6] sm:$0xff] }
 0x2f1   : > { %v2023_v34 = vpop.f32.mrb[8].mxu1 }
 0x2f2   : > { %v917_v36 = vpop.f32.mrb[9].mxu1 }
 0x2f3   : > { %v2024_v37 = vpop.f32.mrb[10].mxu1 }
 0x2f4   : > { %v920_v38 = vpop.f32.mrb[11].mxu1 }
 0x2f9   : > { %v2027_v39 = vpop.f32.mrb[12].mxu1 }
 0x2fa   : > { %v933_v40 = vpop.f32.mrb[13].mxu1 }
 0x2fb   : > { %v2028_v41 = vpop.f32.mrb[14].mxu1 }
 0x2fc   : > { %v936_v42 = vpop.f32.mrb[15].mxu1 }
 0x32b   : > { %v745_v45 = vpop.permute.xlu1 %744 }
 0x32c   : > { %v748_v48 = vsel %vm747_vm7, 0.0, %v745_v45 }
 0x32d   : > { %v2627_v49 = vadd.f32 %v748_v48, %v742_v29 }
 0x32f   : > { %v1007_v52 = vrot.slane %v2627_v49, %v2630_v50  ;;  %v750_v54 = vmul.f32 1.442695, %v2627_v49  ;;  %v1014_v63 = vrot.slane %v2627_v49, %v1013_v53  ;;  %v1021_v11 = vrot.slane %v2627_v49, %v1020_v7 }
 0x330   : > { %v1028_v27 = vrot.slane %v2627_v49, %v1027_v24 }
 0x331   : > { %1009 = vbcast.lane.b32.xlu1 %v1007_v52, 256  ;;  %2182 = vpow2.f32 %v750_v54 }
 0x335   : > { %1016 = vbcast.lane.b32.xlu1 %v1014_v63, 256 }
 0x339   : > { %1023 = vbcast.lane.b32.xlu1 %v1021_v11, 256 }
 0x33b   : > { %v2183_v26 = vpop.eup %2182 }
 0x33c   : > { %v767_v28 = vrot.slane %v2183_v26, %v2641_v25 }
 0x33d   : > { %1030 = vbcast.lane.b32.xlu1 %v1028_v27, 256  ;;  %v1355_v27 = vld [vmem:[%s2974_s6 + $0x18] sm:$0xff] }
 0x33e   : > { %v768_v29 = vcombine.high %v767_v28, %v767_v28  ;;  %v775_v31 = vrot.slane %v767_v28, %v2641_v25  ;;  %v2334_v28 = vmov 7  }
 0x340   : > { %v782_v33 = vrot.slane %v768_v29, %v2641_v25  ;;  %v788_v45 = vrot.slane %v775_v31, %v2630_v50  ;;  %v783_v48 = vcombine.high %v775_v31, %v775_v31  ;;  %v1654_v29 = vld [vmem:[%s2975_s7 + $0x8] sm:$0xff]  ;;  %v1656_v31 = vld [vmem:[%s2975_s7 + $0x18] sm:$0xff] }
 0x341   : > { %1362 = vperm.xlu1 %2165, %v1352_v32   ;;  %1668 = vperm.xlu0 %2166, %v1654_v29   ;;  %v1658_v32 = vld [vmem:[%s2975_s7 + $0x28] sm:$0xff] }
 0x342   : > { %v792_v52 = vrot.slane %v782_v33, %v2630_v50  ;;  %v2652_v53 = vmul.f32 %v917_v36, %v788_v45  ;;  %v2654_v54 = vmul.f32 %v920_v38, %v788_v45  ;;  %v784_v59 = vcombine.high %v782_v33, %v782_v33  ;;  %v1660_v33 = vld [vmem:[%s2975_s7 + $0x38] sm:$0xff] }
 0x343   : > { %v796_v63 = vrot.slane %v783_v48, %v2630_v50 }
 0x344   : > { %v2660_v7 = vmul.f32 %v2023_v34, %v792_v52  ;;  %v2662_v9 = vmul.f32 %v2024_v37, %v792_v52  ;;  %v800_v11 = vrot.slane %v784_v59, %v2630_v50  ;;  %v1356_v34 = vld [vmem:[%s2974_s6 + $0x20] sm:$0xff]  ;;  %v1358_v37 = vld [vmem:[%s2974_s6 + $0x30] sm:$0xff]  ;;  %v1002_v59 = vand.u32 127, %v764_v43 }
 0x345   : > { %v2665_v24 = vmul.f32 %v933_v40, %v796_v63  ;;  %v2667_v26 = vmul.f32 %v936_v42, %v796_v63  ;;  %1367 = vperm.xlu1 %2165, %v1353_v60   ;;  %v1655_v40 = vld [vmem:[%s2975_s7 + $0x10] sm:$0xff]  ;;  %1678 = vperm.xlu0 %2166, %v1656_v31  }
 0x346   : > { %v2669_v36 = vmul.f32 %v2027_v39, %v800_v11  ;;  %v2671_v38 = vmul.f32 %v2028_v41, %v800_v11  ;;  %v1653_v39 = vld [vmem:[%s2975_s7] sm:$0xff]  ;;  %v1659_v42 = vld [vmem:[%s2975_s7 + $0x30] sm:$0xff]  ;;  %vm1003_vm8 = vcmp.ge.s32.totalorder %v2625_v44, %v1002_v59 }
 0x347   : > { %v1657_v41 = vld [vmem:[%s2975_s7 + $0x20] sm:$0xff] }
 0x349   : > { %1377 = vperm.xlu1 %2165, %v1355_v27   ;;  %1688 = vperm.xlu0 %2166, %v1658_v32  }
 0x34d   : > { %1382 = vperm.xlu1 %2165, %v1356_v34   ;;  %1698 = vperm.xlu0 %2166, %v1660_v33   ;;  %v1105_v33 = vrot.slane %v2541_v51, %v2641_v25 }
 0x351   : > { %1392 = vperm.xlu1 %2165, %v1358_v37  }
 0x355   : > { %1663 = vperm.xlu1 %2165, %v1653_v39  }
 0x359   : > { %1673 = vperm.xlu1 %2165, %v1655_v40  }
 0x35d   : > { %1683 = vperm.xlu1 %2165, %v1657_v41  }
 0x361   : > { %1693 = vperm.xlu1 %2165, %v1659_v42  }
 0x365   : > { %2167 = vset.pattern.permute.xlu1 %v2334_v28 }
 0x366   : > { %754 = vperm.xlu1 %2167, %v2627_v49  }
 0x36a   : > { %1417 = vperm.xlu1 %2167, %v788_v45   ;;  %v1038_v45 = vrot.slane %v2627_v49, %v2641_v25 }
 0x36c   : > { %v1046_v48 = vrot.slane %v1038_v45, %v2641_v25 }
 0x36e   : > { %1421 = vperm.xlu1 %2167, %v792_v52   ;;  %v1039_v52 = vcombine.high %v1038_v45, %v1038_v45  ;;  %v1059_v60 = vrot.slane %v1046_v48, %v2630_v50  ;;  %v1054_v39 = vcombine.high %v1046_v48, %v1046_v48 }
 0x370   : > { %v1067_v28 = vrot.slane %v1054_v39, %v2630_v50 }
 0x372   : > { %1425 = vperm.xlu1 %2167, %v796_v63   ;;  %v1053_v63 = vrot.slane %v1039_v52, %v2641_v25 }
 0x374   : > { %v1063_v37 = vrot.slane %v1053_v63, %v2630_v50  ;;  %v1055_v29 = vcombine.high %v1053_v63, %v1053_v63 }
 0x376   : > { %1429 = vperm.xlu1 %2167, %v800_v11   ;;  %v1071_v52 = vrot.slane %v1055_v29, %v2630_v50 }
 0x3a3   : > { %v1010_v11 = vpop.permute.xlu1 %1009 }
 0x3a4   : > { %v1076_v27 = vsub.f32 %v1010_v11, %v1059_v60 }
 0x3a6   : > { %v1082_v34 = vsel %vm1003_vm8, %v1076_v27, -1e+30  ;;  %v1106_v27 = vcombine.high %v1105_v33, %v1105_v33 }
 0x3a7   : > { %v1086_v40 = vmul.f32 1.442695, %v1082_v34  ;;  %v1017_v41 = vpop.permute.xlu1 %1016  ;;  %v1113_v34 = vrot.slane %v1105_v33, %v2641_v25 }
 0x3a8   : > { %v1077_v42 = vsub.f32 %v1017_v41, %v1063_v37  ;;  %v1120_v41 = vrot.slane %v1106_v27, %v2641_v25 }
 0x3a9   : > { %2184 = vpow2.f32 %v1086_v40 }
 0x3aa   : > { %v1083_v43 = vsel %vm1003_vm8, %v1077_v42, -1e+30  ;;  %v1122_v27 = vcombine.high %v1120_v41, %v1120_v41 }
 0x3ab   : > { %v1088_v31 = vmul.f32 1.442695, %v1083_v43  ;;  %v1024_v32 = vpop.permute.xlu1 %1023  ;;  %v1126_v43 = vrot.slane %v1113_v34, %v2630_v50 }
 0x3ac   : > { %v1078_v45 = vsub.f32 %v1024_v32, %v1067_v28 }
 0x3ad   : > { %2186 = vpow2.f32 %v1088_v31  ;;  %v1121_v31 = vcombine.high %v1113_v34, %v1113_v34 }
 0x3ae   : > { %v1084_v48 = vsel %vm1003_vm8, %v1078_v45, -1e+30  ;;  %v1130_v45 = vrot.slane %v1120_v41, %v2630_v50 }
 0x3af   : > { %v1090_v60 = vmul.f32 1.442695, %v1084_v48  ;;  %v1031_v11 = vpop.permute.xlu1 %1030 }
 0x3b0   : > { %v1079_v37 = vsub.f32 %v1031_v11, %v1071_v52  ;;  %v1134_v11 = vrot.slane %v1121_v31, %v2630_v50 }
 0x3b1   : > { %2188 = vpow2.f32 %v1090_v60 }
 0x3b2   : > { %v1085_v63 = vsel %vm1003_vm8, %v1079_v37, -1e+30 }
 0x3b3   : > { %v2185_v39 = vpop.eup %2184  ;;  %v1092_v40 = vmul.f32 1.442695, %v1085_v63 }
 0x3b4   : > { %v1094_v42 = vmul.f32 %v2185_v39, %v2622_v30 }
 0x3b5   : > { %2190 = vpow2.f32 %v1092_v40 }
 0x3b6   : > { %v1143_v28 = vmul.f32 %v1126_v43, %v1094_v42  ;;  %v1138_v43 = vrot.slane %v1122_v27, %v2630_v50 }
 0x3b7   : > { %v2187_v29 = vpop.eup %2186 }
 0x3b8   : > { %v1147_v32 = vpack.c.bf16 %v1143_v28, %v1143_v28  ;;  %v1095_v33 = vmul.f32 %v2187_v29, %v2622_v30 }
 0x3ba   : > { %v1160_v44 = vsel %vm1155_vm9, %v1147_v32, 0  ;;  %v1144_v59 = vmul.f32 %v1130_v45, %v1095_v33 }
 0x3bb   : > { %v2189_v48 = vpop.eup %2188  ;;  %2036 = vmatpush3.bf16.xpose.msra.mxu1 %v1160_v44  ;;  %v1465_v44 = vsel %vm1464_vm10, %v2528_v35, 0 }
 0x3bc   : > { %v1148_v52 = vpack.c.bf16 %v1144_v59, %v1144_v59  ;;  %2047 = vmatprep.subr.bf16.mxu1 %v2326_v5  ;;  %v1096_v60 = vmul.f32 %v2189_v48, %v2622_v30 }
 0x3be   : > { %v1207_v34 = vsel %vm1155_vm9, %v1148_v52, 0  ;;  %v1145_v37 = vmul.f32 %v1134_v11, %v1096_v60 }
 0x3bf   : > { %v2191_v63 = vpop.eup %2190  ;;  %2042 = vmatpush3.bf16.xpose.msra.mxu0 %v1207_v34 }
 0x3c0   : > { %v1363_v39 = vpop.permute.xlu1 %1362  ;;  %v1149_v40 = vpack.c.bf16 %v1145_v37, %v1145_v37  ;;  %2053 = vmatprep.subr.bf16.mxu0 %v2326_v5  ;;  %v1097_v42 = vmul.f32 %v2191_v63, %v2622_v30 }
 0x3c1   : > { %v2742_v28 = vmul.f32 %v1363_v39, %v2591_v13 }
 0x3c2   : > { %2038 = vmatmul.mubr.msk.bf16.vlgmr.msra.gmra.mrb[16].mxu1 %vm1155_vm9, %v1151_v17  ;;  %v1254_v41 = vsel %vm1155_vm9, %v1149_v40, 0  ;;  %v1146_v29 = vmul.f32 %v1138_v43, %v1097_v42 }
 0x3c3   : > { %2048 = vmatpush3.bf16.xpose.msra.mxu1 %v1254_v41  ;;  %2049 = vmatprep.mubr.msk.bf16.mxu1 %vm2327_vm2, %v2326_v5 }
 0x3c4   : > { %2083 = vmatprep.subr.msk.bf16.mxu1 %vm1464_vm10, %v2528_v35  ;;  %v1368_v30 = vpop.permute.xlu1 %1367  ;;  %v1150_v31 = vpack.c.bf16 %v1146_v29, %v1146_v29 }
 0x3c5   : > { %v2753_v32 = vmul.f32 %v1368_v30, %v2597_v16 }
 0x3c6   : > { %2044 = vmatmul.mubr.msk.bf16.vlgmr.msra.gmra.mrb[20].mxu0 %vm1155_vm9, %v1152_v15  ;;  %v1301_v17 = vsel %vm1155_vm9, %v1150_v31, 0 }
 0x3c7   : > { %2054 = vmatpush3.bf16.xpose.msra.mxu0 %v1301_v17  ;;  %2055 = vmatprep.mubr.msk.bf16.mxu0 %vm2327_vm2, %v2326_v5 }
 0x3c8   : > { %v1378_v33 = vpop.permute.xlu1 %1377  ;;  %2069 = vmatprep.subr.bf16.mxu0 %v2326_v5 }
 0x3c9   : > { %v2764_v45 = vmul.f32 %v2593_v14, %v1378_v33 }
 0x3ca   : > { %2050 = vmatmul.mubr.msk.bf16.vlgmr.msra.gmra.mrb[20].mxu1 %vm1155_vm9, %v1153_v23 }
 0x3cb   : > { %2060 = vmatpush3.bf16.msra.mxu1 %v1465_v44 }
 0x3cc   : > { %v1383_v15 = vpop.permute.xlu1 %1382 }
 0x3cd   : > { %v2772_v59 = vmul.f32 %v1383_v15, %v2603_v19 }
 0x3ce   : > { %2056 = vmatmul.mubr.msk.bf16.vlgmr.msra.gmra.mrb[24].mxu0 %vm1155_vm9, %v1154_v21 }
 0x3cf   : > { %2077 = vmatprep.mubr.msk.bf16.mxu0 %vm2327_vm2, %v2326_v5 }
 0x3d0   : > { %v1393_v48 = vpop.permute.xlu1 %1392 }
 0x3d1   : > { %v2781_v52 = vmul.f32 %v2601_v18, %v1393_v48 }
 0x3d4   : > { %v2783_v23 = vpop.permute.xlu1 %1663 }
 0x3d8   : > { %v2785_v35 = vpop.permute.xlu1 %1673 }
 0x3dc   : > { %v2787_v60 = vpop.permute.xlu1 %1683 }
 0x3e0   : > { %v2789_v11 = vpop.permute.xlu1 %1693 }
 0x3e5   : > { %v755_v27 = vpop.permute.xlu1 %754 }
 0x3e6   : > { %v757_v34 = vsub.f32 %v755_v27, %v2627_v49 }
 0x3e8   : > { %v758_v37 = vmul.f32 1.442695, %v757_v34 }
 0x3ea   : > { %2192 = vpow2.f32 %v758_v37 }
 0x3f4   : > { %v2193_v21 = vpop.eup %2192 }
 0x3f5   : > { %v805_v63 = vmul.f32 %v2193_v21, %v2541_v51 }
 0x3f7   : > { %v813_v39 = vrot.slane %v805_v63, %v2641_v25  ;;  %v1548_v63 = vsub.f32 0.0, %v2575_v1 }
 0x3f9   : > { %v814_v40 = vcombine.high %v813_v39, %v813_v39  ;;  %v821_v42 = vrot.slane %v813_v39, %v2641_v25  ;;  %v1549_v39 = vsub.f32 0.0, %v2579_v3 }
 0x3fb   : > { %v834_v43 = vrot.slane %v821_v42, %v2630_v50  ;;  %v828_v41 = vrot.slane %v814_v40, %v2641_v25  ;;  %v829_v29 = vcombine.high %v821_v42, %v821_v42  ;;  %v1550_v40 = vsub.f32 0.0, %v2573_v0 }
 0x3fc   : > { %v1556_v42 = vmul.f32 1.442695, %v1548_v63 }
 0x3fd   : > { %v1440_v30 = vmul.f32 %v834_v43, %v2591_v13  ;;  %v1441_v31 = vmul.f32 %v834_v43, %v2597_v16  ;;  %v838_v49 = vrot.slane %v828_v41, %v2630_v50  ;;  %v842_v17 = vrot.slane %v829_v29, %v2630_v50 }
 0x3fe   : > { %v830_v33 = vcombine.high %v828_v41, %v828_v41  ;;  %v1558_v43 = vmul.f32 1.442695, %v1549_v39  ;;  %v1551_v41 = vsub.f32 0.0, %v2577_v2  ;;  %v1560_v29 = vmul.f32 1.442695, %v1550_v40 }
 0x3ff   : > { %v1448_v51 = vpack.c.bf16 %v1441_v31, %v1440_v30  ;;  %v1442_v44 = vmul.f32 %v2589_v12, %v838_v49  ;;  %v1443_v15 = vmul.f32 %v2593_v14, %v838_v49  ;;  %v1444_v48 = vmul.f32 %v842_v17, %v2603_v19  ;;  %v2172_v14 = vld [vmem:[%s2976_s8] sm:$0xff]   ;;  %v2173_v19 = vld [vmem:[%s2976_s8 + $0x8] sm:$0xff]  }
 0x400   : > { %v1445_v27 = vmul.f32 %v842_v17, %v2609_v22  ;;  %v846_v25 = vrot.slane %v830_v33, %v2630_v50  ;;  %2070 = vmatpush3.bf16.msra.mxu0 %v2172_v14  ;;  %v2175_v50 = vld [vmem:[%s2976_s8 + $0x18] sm:$0xff]   ;;  %2194 = vpow2.f32 %v1556_v42  ;;  %v1552_v30 = vsub.f32 0.0, %v2583_v6  ;;  %v1373_v42 = vpop.permute.xlu0 %1372 }
 0x401   : > { %2061 = vmatprep.mubr.msk.bf16.mxu1 %vm1155_vm9, %v1448_v51  ;;  %v1449_v13 = vpack.c.bf16 %v1443_v15, %v1442_v44  ;;  %2071 = vmatprep.subr.bf16.mxu0 %v2326_v5  ;;  %2196 = vpow2.f32 %v1558_v43  ;;  %v1553_v31 = vsub.f32 0.0, %v2587_v10  ;;  %v1562_v49 = vmul.f32 1.442695, %v1551_v41 }
 0x402   : > { %v1450_v16 = vpack.c.bf16 %v1445_v27, %v1444_v48  ;;  %v1446_v34 = vmul.f32 %v2601_v18, %v846_v25  ;;  %v1447_v37 = vmul.f32 %v2605_v20, %v846_v25  ;;  %v2174_v18 = vld [vmem:[%s2976_s8 + $0x10] sm:$0xff]   ;;  %2198 = vpow2.f32 %v1560_v29 }
 0x403   : > { %2062 = vmatmul.mubr.msk.bf16.vlgmr.msra.gmra.mrb[24].mxu1 %vm1155_vm9, %v1449_v13  ;;  %v1564_v17 = vmul.f32 1.442695, %v1552_v30  ;;  %v1566_v33 = vmul.f32 1.442695, %v1553_v31  ;;  %2200 = vpow2.f32 %v1562_v49  ;;  %v1555_v51 = vsub.f32 0.0, %v2585_v8 }
 0x404   : > { %2065 = vmatprep.mubr.msk.bf16.mxu1 %vm1155_vm9, %v1450_v16  ;;  %v1451_v21 = vpack.c.bf16 %v1447_v37, %v1446_v34  ;;  %2072 = vmatpush3.bf16.msra.mxu0 %v2173_v19 }
 0x405   : > { %2073 = vmatprep.subr.bf16.mxu0 %v2326_v5  ;;  %2202 = vpow2.f32 %v1564_v17  ;;  %v1570_v48 = vmul.f32 1.442695, %v1555_v51 }
 0x406   : > { %2204 = vpow2.f32 %v1566_v33 }
 0x408   : > { %2074 = vmatpush3.bf16.msra.mxu0 %v2174_v18 }
 0x409   : > { %2075 = vmatprep.subr.bf16.mxu0 %v2326_v5  ;;  %v1554_v5 = vsub.f32 0.0, %v2581_v4 }
 0x40a   : > { %v2195_v15 = vpop.eup %2194 }
 0x40b   : > { %2066 = vmatmul.mubr.msk.bf16.gmra.mrb[28].mxu1 %vm1155_vm9, %v1451_v21  ;;  %v1568_v44 = vmul.f32 1.442695, %v1554_v5  ;;  %v2197_v27 = vpop.eup %2196  ;;  %v1572_v13 = vadd.f32 1.0, %v2195_v15 }
 0x40c   : > { %2076 = vmatpush3.bf16.msra.mxu0 %v2175_v50  ;;  %v2199_v25 = vpop.eup %2198  ;;  %v1573_v16 = vadd.f32 1.0, %v2197_v27 }
 0x40d   : > { %2206 = vpow2.f32 %v1568_v44  ;;  %v2201_v34 = vpop.eup %2200  ;;  %v1574_v37 = vadd.f32 1.0, %v2199_v25  ;;  %v1402_v25 = vmul.f32 %v2589_v12, %v1373_v42 }
 0x40e   : > { %2208 = vpow2.f32 %v1570_v48  ;;  %v1575_v19 = vadd.f32 1.0, %v2201_v34 }
 0x40f   : > { %2210 = vrcp.f32 %v1572_v13  ;;  %v2203_v21 = vpop.eup %2202  ;;  %v1388_v13 = vpop.permute.xlu0 %1387 }
 0x410   : > { %2212 = vrcp.f32 %v1573_v16  ;;  %v2205_v14 = vpop.eup %2204  ;;  %v1576_v50 = vadd.f32 1.0, %v2203_v21  ;;  %v1405_v42 = vmul.f32 %v1388_v13, %v2609_v22 }
 0x411   : > { %2214 = vrcp.f32 %v1574_v37  ;;  %v1577_v63 = vadd.f32 1.0, %v2205_v14 }
 0x412   : > { %2216 = vrcp.f32 %v1575_v19 }
 0x413   : > { %2218 = vrcp.f32 %v1576_v50 }
 0x414   : > { %2220 = vrcp.f32 %v1577_v63 }
 0x417   : > { %v2207_v18 = vpop.eup %2206 }
 0x418   : > { %v2209_v39 = vpop.eup %2208  ;;  %v1578_v40 = vadd.f32 1.0, %v2207_v18 }
 0x419   : > { %v2211_v43 = vpop.eup %2210  ;;  %v1579_v41 = vadd.f32 1.0, %v2209_v39 }
 0x41a   : > { %v2213_v30 = vpop.eup %2212  ;;  %2222 = vrcp.f32 %v1578_v40  ;;  %v1596_v33 = vmul.f32 %v2211_v43, %v2575_v1 }
 0x41b   : > { %v2215_v17 = vpop.eup %2214  ;;  %v1597_v48 = vmul.f32 %v2213_v30, %v2579_v3  ;;  %2224 = vrcp.f32 %v1579_v41  ;;  %v1398_v30 = vpop.permute.xlu0 %1397 }
 0x41c   : > { %v2217_v1 = vpop.eup %2216 }
 0x41d   : > { %v2219_v18 = vpop.eup %2218 }
 0x41e   : > { %v2221_v63 = vpop.eup %2220 }
 0x41f   : > { %v1601_v22 = vmul.f32 %v2221_v63, %v2587_v10 }
 0x495   : > { %v1196_v29 = vpop.f32.mrb[16].mxu1 }
 0x496   : > { %v1344_v31 = vadd.f32 %v1196_v29, %v2652_v53  ;;  %v2039_v49 = vpop.f32.mrb[17].mxu1  ;;  %v2223_v29 = vpop.eup %2222 }
 0x497   : > { %v1199_v5 = vpop.f32.mrb[18].mxu1  ;;  %v2225_v13 = vpop.eup %2224 }
 0x498   : > { %v1408_v51 = vadd.f32 %v2742_v28, %v1344_v31  ;;  %v1345_v44 = vadd.f32 %v1199_v5, %v2654_v54  ;;  %v2040_v15 = vpop.f32.mrb[19].mxu1  ;;  %v1598_v28 = vmul.f32 %v2215_v17, %v2573_v0 }
 0x499   : > { %v1243_v27 = vpop.f32.mrb[20].mxu0 }
 0x49a   : > { %v2841_v16 = vmul.f32 %v1596_v33, %v1408_v51  ;;  %v1409_v53 = vadd.f32 %v2753_v32, %v1345_v44  ;;  %v1346_v34 = vadd.f32 %v1243_v27, %v2660_v7  ;;  %v2045_v37 = vpop.f32.mrb[21].mxu0  ;;  %v1599_v32 = vmul.f32 %v2217_v1, %v2577_v2 }
 0x49b   : > { %v1246_v21 = vpop.f32.mrb[22].mxu0 }
 0x49c   : > { %v1612_v54 = vmul.f32 %v2841_v16, %v2841_v16  ;;  %v2848_v3 = vmul.f32 %v1597_v48, %v1409_v53  ;;  %v1410_v14 = vadd.f32 %v1402_v25, %v1346_v34  ;;  %v1347_v12 = vadd.f32 %v1246_v21, %v2662_v9  ;;  %v2046_v19 = vpop.f32.mrb[23].mxu0 }
 0x49d   : > { %v1290_v50 = vpop.f32.mrb[20].mxu1  ;;  %v1602_v53 = vmul.f32 %v2223_v29, %v2581_v4 }
 0x49e   : > { %v1613_v7 = vmul.f32 %v2848_v3, %v2848_v3  ;;  %v2854_v39 = vmul.f32 %v1598_v28, %v1410_v14  ;;  %v1411_v0 = vadd.f32 %v2764_v45, %v1347_v12  ;;  %v2051_v40 = vpop.f32.mrb[21].mxu1  ;;  %v1620_v43 = vsel %vm1155_vm9, %v1612_v54, 0.0 }
 0x49f   : > { %v1348_v9 = vadd.f32 %v1290_v50, %v2665_v24  ;;  %v1293_v41 = vpop.f32.mrb[22].mxu1  ;;  %v1600_v45 = vmul.f32 %v2219_v18, %v2583_v6 }
 0x4a0   : > { %v1621_v31 = vsel %vm1155_vm9, %v1613_v7, 0.0  ;;  %v1614_v2 = vmul.f32 %v2854_v39, %v2854_v39  ;;  %v1607_v49 = vmul.f32 %v1599_v32, %v1411_v0  ;;  %v1349_v5 = vadd.f32 %v1293_v41, %v2667_v26  ;;  %v2052_v17 = vpop.f32.mrb[23].mxu1 }
 0x4a1   : > { %v1622_v33 = vadd.f32 %v1621_v31, %v1620_v43  ;;  %v1412_v51 = vadd.f32 %v2772_v59, %v1348_v9  ;;  %v1337_v24 = vpop.f32.mrb[24].mxu0  ;;  %v1407_v26 = vmul.f32 %v2605_v20, %v1398_v30  ;;  %v1669_v30 = vpop.permute.xlu0 %1668 }
 0x4a2   : > { %v1623_v44 = vsel %vm1155_vm9, %v1614_v2, 0.0  ;;  %v1615_v15 = vmul.f32 %v1607_v49, %v1607_v49  ;;  %v1413_v48 = vadd.f32 %v1405_v42, %v1349_v5  ;;  %v1350_v27 = vadd.f32 %v1337_v24, %v2669_v36  ;;  %v2057_v25 = vpop.f32.mrb[25].mxu0 }
 0x4a3   : > { %v1624_v34 = vadd.f32 %v1623_v44, %v1622_v33  ;;  %v1608_v6 = vmul.f32 %v1600_v45, %v1412_v51  ;;  %v1340_v37 = vpop.f32.mrb[26].mxu0  ;;  %v1603_v36 = vmul.f32 %v2225_v13, %v2585_v8 }
 0x4a4   : > { %v1625_v10 = vsel %vm1155_vm9, %v1615_v15, 0.0  ;;  %v1609_v1 = vmul.f32 %v1601_v22, %v1413_v48  ;;  %v1414_v59 = vadd.f32 %v2781_v52, %v1350_v27  ;;  %v1351_v28 = vadd.f32 %v1340_v37, %v2671_v38  ;;  %v2058_v21 = vpop.f32.mrb[27].mxu0  ;;  %v1418_v22 = vpop.permute.xlu1 %1417 }
 0x4a5   : > { %v1626_v54 = vadd.f32 %v1625_v10, %v1624_v34  ;;  %v1616_v14 = vmul.f32 %v1608_v6, %v1608_v6  ;;  %v1679_v17 = vpop.permute.xlu0 %1678 }
 0x4a6   : > { %v1617_v12 = vmul.f32 %v1609_v1, %v1609_v1  ;;  %v1610_v19 = vmul.f32 %v1602_v53, %v1414_v59  ;;  %v1415_v4 = vadd.f32 %v1407_v26, %v1351_v28 }
 0x4a7   : > { %v1627_v20 = vsel %vm1155_vm9, %v1616_v14, 0.0 }
 0x4a8   : > { %v1628_v18 = vadd.f32 %v1627_v20, %v1626_v54  ;;  %v1629_v50 = vsel %vm1155_vm9, %v1617_v12, 0.0  ;;  %v1618_v63 = vmul.f32 %v1610_v19, %v1610_v19  ;;  %v1611_v32 = vmul.f32 %v1603_v36, %v1415_v4  ;;  %v1422_v59 = vpop.permute.xlu1 %1421 }
 0x4a9   : > { %v1689_v45 = vpop.permute.xlu0 %1688 }
 0x4aa   : > { %v1630_v7 = vadd.f32 %v1629_v50, %v1628_v18  ;;  %v1631_v52 = vsel %vm1155_vm9, %v1618_v63, 0.0  ;;  %v1619_v0 = vmul.f32 %v1611_v32, %v1611_v32 }
 0x4ac   : > { %v1632_v38 = vadd.f32 %v1631_v52, %v1630_v7  ;;  %v1633_v40 = vsel %vm1155_vm9, %v1619_v0, 0.0 }
 0x4ad   : > { %v1699_v48 = vpop.permute.xlu0 %1698 }
 0x4ae   : > { %v1634_v42 = vadd.f32 %v1633_v40, %v1632_v38 }
 0x4b0   : > { %v1635_v43 = vrot.slane %v1634_v42, 4 }
 0x4b2   : > { %v1636_v8 = vadd.f32 %v1635_v43, %v1634_v42  ;;  %v2228_v42 = vld [vmem:[%s2469_s19] sm:$0xff]  ;;  %s2229_s19 = scalar_lea.vmem %s2912_s0, 128 }
 0x4b3   : > { %p2230_p1 = scmp.ne.s32.totalorder %s2912_s0, %s2229_s19  ;;  %p2237_p6 = scmp.lt.s32.totalorder %s2235_s21, %s2229_s19 }
 0x4b4   : > { %v1637_v9 = vrot.slane %v1636_v8, 2 }
 0x4b5   : > { %p2231_p2 = pnand %p2230_p1, %p2437_p3  ;;  %p2238_p7 = por %p2237_p6, %p2236_p5 }
 0x4b6   : > { %v1638_v41 = vadd.f32 %v1637_v9, %v1636_v8 }
 0x4b7   : > { %p2232_p4 = pneg %p2231_p2 }
 0x4b8   : > { %v1639_v29 = vrot.slane %v1638_v41, 1 }
 0x4b9   : > { %p2239_p9 = pnand %p2238_p7, %p2232_p4 }
 0x4ba   : > { %v1640_v31 = vadd.f32 %v1639_v29, %v1638_v41 }
 0x4bc   : > { %v1642_v2 = vmul.f32 0.015625, %v1640_v31 }
 0x4be   : > { %v1643_v5 = vadd.f32 1e-05, %v1642_v2 }
 0x4c0   : > { %2226 = vrsqrt.f32 %v1643_v5 }
 0x4ca   : > { %v2227_v33 = vpop.eup %2226 }
 0x4cb   : > { %v1651_v51 = vmul.f32 %v2227_v33, %v1610_v19  ;;  %v1652_v24 = vmul.f32 %v2227_v33, %v1611_v32  ;;  %v1645_v44 = vmul.f32 %v2227_v33, %v2841_v16  ;;  %v1646_v15 = vmul.f32 %v2227_v33, %v2848_v3 }
 0x4cc   : > { %v1647_v27 = vmul.f32 %v2227_v33, %v2854_v39  ;;  %v1648_v25 = vmul.f32 %v2227_v33, %v1607_v49  ;;  %v1649_v13 = vmul.f32 %v2227_v33, %v1608_v6  ;;  %v1650_v53 = vmul.f32 %v2227_v33, %v1609_v1  ;;  %v1426_v49 = vpop.permute.xlu1 %1425 }
 0x4cd   : > { %v1707_v26 = vmul.f32 %v2789_v11, %v1651_v51  ;;  %v1708_v34 = vmul.f32 %v1699_v48, %v1652_v24  ;;  %v1701_v37 = vmul.f32 %v2783_v23, %v1645_v44  ;;  %v1702_v10 = vmul.f32 %v1669_v30, %v1646_v15 }
 0x4ce   : > { %v1703_v28 = vmul.f32 %v2785_v35, %v1647_v27  ;;  %v1704_v21 = vmul.f32 %v1679_v17, %v1648_v25  ;;  %v1705_v16 = vmul.f32 %v2787_v60, %v1649_v13  ;;  %v1706_v54 = vmul.f32 %v1689_v45, %v1650_v53 }
 0x4cf   : > { %v1712_v3 = vpack.c.bf16 %v1708_v34, %v1707_v26  ;;  %v1709_v14 = vpack.c.bf16 %v1702_v10, %v1701_v37  ;;  %v1434_v6 = vmul.f32 %v1422_v59, %v2547_v55  ;;  %v1432_v11 = vmul.f32 %v1418_v22, %v2534_v46 }
 0x4d0   : > { %v1710_v36 = vpack.c.bf16 %v1704_v21, %v1703_v28  ;;  %v1711_v39 = vpack.c.bf16 %v1706_v54, %v1705_v16  ;;  %v1435_v1 = vmul.f32 %v1422_v59, %v2549_v56  ;;  %v1433_v19 = vmul.f32 %v1418_v22, %v2536_v47  ;;  %v1430_v50 = vpop.permute.xlu1 %1429 }
 0x4d1   : > { %1721 = vxpose.xlu0.c.b16.start [1/4] (short) (narrow) %v1709_v14, 16  ;;  %v1438_v46 = vmul.f32 %v1430_v50, %v2564_v61  ;;  %v1436_v47 = vmul.f32 %v1426_v49, %v2553_v57  ;;  %v1439_v63 = vmul.f32 %v1430_v50, %v2566_v62  ;;  %v1437_v52 = vmul.f32 %v1426_v49, %v2555_v58 }
 0x4d5   : > { %1722 = vxpose.xlu0.c.b16.cont [2/4] (short) (narrow) %v1710_v36, 16 }
 0x4d6   : > { %v2063_v23 = vpop.f32.mrb[24].mxu1 }
 0x4d7   : > { %v1534_v12 = vadd.f32 %v2063_v23, %v1434_v6  ;;  %v1501_v35 = vpop.f32.mrb[25].mxu1 }
 0x4d8   : > { %v1532_v60 = vadd.f32 %v1501_v35, %v1432_v11  ;;  %v2064_v4 = vpop.f32.mrb[26].mxu1 }
 0x4d9   : > { %1542 = vst.msk [vmem:[#allocation2 + $0x10] sm:$0xff] %vm867_vm3, %v1534_v12  ;;  %v1535_v20 = vadd.f32 %v2064_v4, %v1435_v1  ;;  %1723 = vxpose.xlu0.c.b16.cont [3/4] (short) (narrow) %v1711_v39, 16  ;;  %v1504_v18 = vpop.f32.mrb[27].mxu1 }
 0x4da   : > { %1540 = vst.msk [vmem:[#allocation2] sm:$0xff] %vm867_vm3, %v1532_v60  ;;  %v1533_v55 = vadd.f32 %v1504_v18, %v1433_v19 }
 0x4db   : > { %1543 = vst.msk [vmem:[#allocation2 + $0x18] sm:$0xff] %vm867_vm3, %v1535_v20 }
 0x4dc   : > { %1541 = vst.msk [vmem:[#allocation2 + $0x8] sm:$0xff] %vm867_vm3, %v1533_v55 }
 0x4dd   : > { %1724 = vxpose.xlu0.c.b16.end [4/4] (short) (narrow) %v1712_v3, 16 }
 0x4de   : > { %v2067_v56 = vpop.f32.mrb[28].mxu1 }
 0x4df   : > { %v1538_v32 = vadd.f32 %v2067_v56, %v1438_v46  ;;  %v1517_v7 = vpop.f32.mrb[29].mxu1 }
 0x4e0   : > { %v1536_v0 = vadd.f32 %v1517_v7, %v1436_v47  ;;  %v2068_v38 = vpop.f32.mrb[30].mxu1 }
 0x4e1   : > { %1546 = vst.msk [vmem:[#allocation2 + $0x30] sm:$0xff] %vm867_vm3, %v1538_v32  ;;  %v1539_v40 = vadd.f32 %v2068_v38, %v1439_v63  ;;  %v1520_v61 = vpop.f32.mrb[31].mxu1 }
 0x4e2   : > { %1544 = vst.msk [vmem:[#allocation2 + $0x20] sm:$0xff] %vm867_vm3, %v1536_v0  ;;  %v1537_v57 = vadd.f32 %v1520_v61, %v1437_v52 }
 0x4e3   : > { %1547 = vst.msk [vmem:[#allocation2 + $0x38] sm:$0xff] %vm867_vm3, %v1539_v40 }
 0x4e4   : > { %1545 = vst.msk [vmem:[#allocation2 + $0x28] sm:$0xff] %vm867_vm3, %v1537_v57 }
 0x537   : > { %v1729_v62 = vpop.trf.xlu0 }
 0x538   : > { %2078 = vmatmul.mubr.msk.bf16.vlgmr.msra.gmra.mrb[28].mxu0 %vm1761_vm11, %v1729_v62 }
 0x60b   : > { %v1799_v58 = vpop.f32.mrb[28].mxu0 }
 0x60c   : > { %v1805_v43 = vadd.f32 %v2228_v42, %v1799_v58  ;;  %v2079_v8 = vpop.f32.mrb[29].mxu0 }
 0x60d   : > { %v1802_v9 = vpop.f32.mrb[30].mxu0 }
 0x60e   : > { %1806 = vst.msk [vmem:[%s2990_s12] sm:$0xff] %vm372_vm1, %v1805_v43  ;;  %v2080_v41 = vpop.f32.mrb[31].mxu0 }
 0x60f   : > { %2242 = shalt.err (!%p2239_p9)
}
 0x610   : > { %s2243_s29 = scalar_lea.hbm %s2910_s20, 128  ;;  %s2247_s15 = scalar_lea.hbm %s2977_s9, 512 }
 0x611   : > { %p2244_p10 = scmp.ne.s32.totalorder %s2910_s20, %s2243_s29  ;;  %p2248_p13 = scmp.lt.u32.totalorder %s2910_s20, %s2977_s9 }
 0x612   : > { %p2249_p0 = scmp.lt.u32.totalorder %s2247_s15, %s2243_s29  ;;  %p2251_p2 = scmp.lt.u32.totalorder %s2243_s29, %s2910_s20 }
 0x613   : > { %p2245_p11 = pnand %p2244_p10, %p2437_p3 }
 0x614   : > { %p2250_p1 = por %p2249_p0, %p2248_p13 }
 0x615   : > { %p2246_p12 = pneg %p2245_p11 }
 0x616   : > { %p2252_p4 = por %p2251_p2, %p2250_p1 }
 0x618   : > { %p2253_p5 = pnand %p2252_p4, %p2246_p12 }
 0x61a   : > { %2256 = shalt.err (!%p2253_p5)
}
 0x61b   : > { %2084 = dma.vmem_to_hbm [thread:$0]  (%p2437_p3), %s2912_s0, 128, %s2910_s20, %s1808_s28  }
 0x61c PF: > { %p2090_p6 = scmp.ge.s32.totalorder %s2323_s16, 2  ;;  %s1835_s13 = sand.u32 1, %s2295_s30  }
 0x61d   : > { %s1836_s19 = scalar_lea.sflag [#allocation4], %s1835_s13 }
 0x61e   : > { %p2087_p7 = pnand %p2090_p6, %p2446_p8 }
 0x620   : > { %2290 = dma.done.wait (!%p2087_p7), %s1836_s19, 128  }
 0x621   : > { %2292 = vsyncadd (!%p2087_p7), %s1836_s19, 4294967168  ;;  %s22_s16 = sadd.s32 1, %s2323_s16   ;;  %s2992_s13 = sld [smem:[#allocation6_spill]] }
 0x622   : > { %p19_p9 = scmp.ge.s32.totalorder %s22_s16, 6   ;;  %s2993_s22 = sld [smem:[#allocation7_spill]] }
 0x623   : > { %s2994_s15 = sld [smem:[#allocation8_spill]]  ;;  %s2995_s30 = smov %s2299_s10 }
 0x624   : > { %s2996_s10 = smov %s2303_s11  ;;  %s2997_s11 = smov %s2455_s27 }
 0x625   : > { %s2998_s12 = smov %s2315_s14  ;;  %21 = sbr.rel (!%p19_p9) target bundleno = 7 (0x7), region = 95 }
 0x628   : > { %s2999_s14 = smov %s2993_s22 }
 0x62c   :  { %1841 = vsyncpa [#allocation4], 1 }
 0x62d   :  { %1843 = vsyncpa [#allocation4 + $0x1], 1 }

</bundles_post_ra>
